<compile_context>
chip_gen: v7x
topology: tpu7x:2x2x1
jax: 0.10.0
libtpu: 0.0.40
codegen_flags: <defaults>
</compile_context>

<pallas_src>
import functools

import jax
import jax.numpy as jnp
from jax import lax
from jax.experimental import pallas as pl
from jax.experimental.pallas import tpu as pltpu


def _pick_tile(n, target, mult, prefer_multiple_tiles):
    """Largest multiple of `mult` that divides n and is <= target.

    If prefer_multiple_tiles, prefer the largest candidate with n//t >= 2 so the
    'parallel' row axis can split across v7x's two TensorCores. Falls back to the
    full dimension when n has no suitable divisor (single untiled block).
    """
    cands = [t for t in range(mult, min(n, target) + 1, mult) if n % t == 0]
    if not cands:
        # TODO(synk): for large n not divisible by 32/128 this single full-size
        # block can exceed VMEM; pad A/X to tile multiples instead.
        return n
    if prefer_multiple_tiles:
        split = [t for t in cands if n // t >= 2]
        if split:
            return max(split)
    return max(cands)


# --------------------------------------------------------------------------- #
# Kernel 1 (prep): single pass over the raw f32 adjacency.
#   a8   = int8(A)                           (compact copy for later passes)
#   dinv = rsqrt(rowsum(A) + 1)              (self loop folded into the +1)
#   S1   = bf16(dinv * (X @ W1))
# --------------------------------------------------------------------------- #
def _prep_kernel(a_ref, x_ref, w1_ref, a8_ref, dinv_ref, s1_ref, deg_acc):
    k = pl.program_id(1)

    a_f32 = a_ref[...]                       # loaded once, used for cast + reduce
    a8_ref[...] = a_f32.astype(jnp.int8)     # exact for 0/1 adjacency

    @pl.when(k == 0)
    def _():
        deg_acc[...] = jnp.ones_like(deg_acc)  # self-loop contribution

    deg_acc[...] += jnp.sum(a_f32, axis=1, keepdims=True)

    @pl.when(k == pl.num_programs(1) - 1)
    def _():
        dinv = lax.rsqrt(deg_acc[...])
        dinv_ref[...] = dinv
        h0 = jnp.dot(x_ref[...], w1_ref[...], preferred_element_type=jnp.float32)
        s1_ref[...] = (dinv * h0).astype(jnp.bfloat16)


# --------------------------------------------------------------------------- #
# Kernel 2: layer-1 aggregation + ReLU + (reassociated) layer-2 transform.
#   H1 = relu(dinv * (A @ S1 + S1[rows]) + b1)   (== relu(A_norm @ (X@W1) + b1))
#   S2 = dinv * (H1 @ W2)                        (pre-scaled for pass 3)
# Dropout(p=0) is the identity.
# Two variants: streamed S1 k-blocks, or the whole S1 resident in VMEM.
# --------------------------------------------------------------------------- #
def _layer1_finalize(acc, dinv_ref, b1_ref, w2_ref, s2_ref):
    dinv = dinv_ref[...]
    h1 = jnp.maximum(dinv * acc[...] + b1_ref[...], 0.0)           # ReLU
    p = jnp.dot(h1, w2_ref[...], preferred_element_type=jnp.float32)
    s2_ref[...] = dinv * p


def _layer1_stream_kernel(a_ref, s_k_ref, s_i_ref, dinv_ref, b1_ref, w2_ref,
                          s2_ref, acc):
    k = pl.program_id(1)

    @pl.when(k == 0)
    def _():
        acc[...] = s_i_ref[...].astype(jnp.float32)   # self-loop term

    acc[...] += jnp.dot(a_ref[...].astype(jnp.bfloat16), s_k_ref[...],
                        preferred_element_type=jnp.float32)

    @pl.when(k == pl.num_programs(1) - 1)
    def _():
        _layer1_finalize(acc, dinv_ref, b1_ref, w2_ref, s2_ref)


def _layer1_resident_kernel(a_ref, s1_ref, dinv_ref, b1_ref, w2_ref,
                            s2_ref, acc, *, tm, tk):
    i = pl.program_id(0)
    k = pl.program_id(1)

    @pl.when(k == 0)
    def _():
        row0 = pl.multiple_of(i * tm, tm)
        acc[...] = s1_ref[pl.ds(row0, tm), :].astype(jnp.float32)  # self loop

    col0 = pl.multiple_of(k * tk, tk)
    s_k = s1_ref[pl.ds(col0, tk), :]
    acc[...] += jnp.dot(a_ref[...].astype(jnp.bfloat16), s_k,
                        preferred_element_type=jnp.float32)

    @pl.when(k == pl.num_programs(1) - 1)
    def _():
        _layer1_finalize(acc, dinv_ref, b1_ref, w2_ref, s2_ref)


# --------------------------------------------------------------------------- #
# Kernel 3: layer-2 aggregation (n_out columns only) + prediction head.
#   Z   = dinv * (A @ S2 + S2[rows]) + b2     (== A_norm @ (H1 @ W2) + b2)
#   out = softmax(Z, axis=1)  or  sigmoid(Z)
# --------------------------------------------------------------------------- #
def _layer2_kernel(a_ref, s_k_ref, s_i_ref, dinv_ref, b2_ref, out_ref, acc,
                   *, binary):
    k = pl.program_id(1)

    @pl.when(k == 0)
    def _():
        acc[...] = s_i_ref[...]                        # self-loop term (f32)

    acc[...] += jnp.dot(a_ref[...].astype(jnp.bfloat16),
                        s_k_ref[...].astype(jnp.bfloat16),
                        preferred_element_type=jnp.float32)

    @pl.when(k == pl.num_programs(1) - 1)
    def _():
        z = dinv_ref[...] * acc[...] + b2_ref[...]
        if binary:
            out = 1.0 / (1.0 + jnp.exp(-z))                       # Sigmoid
        else:
            z = z - jnp.max(z, axis=1, keepdims=True)             # Softmax(dim=1)
            e = jnp.exp(z)
            out = e / jnp.sum(e, axis=1, keepdims=True)
        out_ref[...] = out.astype(out_ref.dtype)


# --------------------------------------------------------------------------- #
# Wrapper
# --------------------------------------------------------------------------- #
def gcn_forward(X, A, params, *, binary, tm_target=512, tk_target=2048,
                s_resident_bytes=8 * 1024 * 1024):
    w1, b1, w2, b2 = params["w1"], params["b1"], params["w2"], params["b2"]
    n, d = X.shape
    f = w1.shape[1]
    n_out = w2.shape[1]

    tm = _pick_tile(n, tm_target, 32, prefer_multiple_tiles=True)   # rows (int8-safe)
    tk = _pick_tile(n, tk_target, 128, prefer_multiple_tiles=False) # reduction / lanes
    grid = (n // tm, n // tk)
    n_steps = grid[0] * grid[1]

    cparams = pltpu.CompilerParams(
        dimension_semantics=("parallel", "arbitrary"),
        vmem_limit_bytes=32 * 1024 * 1024,
    )

    def a_spec(dtype_bytes, extra_buffering):
        kwargs = {}
        if extra_buffering and n_steps >= 3:
            kwargs["pipeline_mode"] = pl.Buffered(3)
        return pl.BlockSpec((tm, tk), lambda i, k: (i, k), **kwargs)

    # --- pass 1: A compaction + degrees + X @ W1 (row-scaled, bf16) ---------
    a8, dinv, s1 = pl.pallas_call(
        _prep_kernel,
        out_shape=(jax.ShapeDtypeStruct((n, n), jnp.int8),
                   jax.ShapeDtypeStruct((n, 1), jnp.float32),
                   jax.ShapeDtypeStruct((n, f), jnp.bfloat16)),
        grid=grid,
        in_specs=[
            a_spec(4, False),                              # A (f32) tile
            pl.BlockSpec((tm, d), lambda i, k: (i, 0)),    # X row block
            pl.BlockSpec((d, f), lambda i, k: (0, 0)),     # W1
        ],
        out_specs=(
            pl.BlockSpec((tm, tk), lambda i, k: (i, k)),   # int8 A copy
            pl.BlockSpec((tm, 1), lambda i, k: (i, 0)),    # dinv
            pl.BlockSpec((tm, f), lambda i, k: (i, 0)),    # S1 (bf16)
        ),
        scratch_shapes=[pltpu.VMEM((tm, 1), jnp.float32)],
        compiler_params=cparams,
        cost_estimate=pl.CostEstimate(
            flops=n * n + 2 * n * d * f,
            transcendentals=n,
            bytes_accessed=n * n * 5 + n * (d * 4 + f * 2 + 4) + d * f * 4,
        ),
    )(A, X, w1)

    # Keep S1 fully resident in VMEM when it fits a conservative (v7x-safe) budget.
    resident = (n * f * 2) <= s_resident_bytes

    if resident:
        layer1_kernel = functools.partial(_layer1_resident_kernel, tm=tm, tk=tk)
        l1_in_specs = [
            a_spec(1, True),                               # int8 A tile
            pl.BlockSpec((n, f), lambda i, k: (0, 0)),     # resident S1 (loaded once)
            pl.BlockSpec((tm, 1), lambda i, k: (i, 0)),    # dinv row block
            pl.BlockSpec((1, f), lambda i, k: (0, 0)),     # b1
            pl.BlockSpec((f, n_out), lambda i, k: (0, 0)), # W2
        ]
        l1_args = (a8, s1, dinv, b1, w2)
    else:
        layer1_kernel = _layer1_stream_kernel
        l1_in_specs = [
            a_spec(1, True),                               # int8 A tile
            pl.BlockSpec((tk, f), lambda i, k: (k, 0)),    # S1 k-block (bf16)
            pl.BlockSpec((tm, f), lambda i, k: (i, 0)),    # S1 row block (self loop)
            pl.BlockSpec((tm, 1), lambda i, k: (i, 0)),    # dinv row block
            pl.BlockSpec((1, f), lambda i, k: (0, 0)),     # b1
            pl.BlockSpec((f, n_out), lambda i, k: (0, 0)), # W2
        ]
        l1_args = (a8, s1, s1, dinv, b1, w2)

    # --- pass 2: layer-1 aggregation + ReLU + H1 @ W2 -----------------------
    s2 = pl.pallas_call(
        layer1_kernel,
        out_shape=jax.ShapeDtypeStruct((n, n_out), jnp.float32),
        grid=grid,
        in_specs=l1_in_specs,
        out_specs=pl.BlockSpec((tm, n_out), lambda i, k: (i, 0)),
        scratch_shapes=[pltpu.VMEM((tm, f), jnp.float32)],
        compiler_params=cparams,
        cost_estimate=pl.CostEstimate(
            flops=2 * n * n * f + 2 * n * f * n_out + 4 * n * f,
            transcendentals=0,
            bytes_accessed=n * n + 2 * n * f * 2 + n * n_out * 4 + f * n_out * 4,
        ),
    )(*l1_args)

    # --- pass 3: layer-2 aggregation (n_out cols) + prediction head ---------
    out = pl.pallas_call(
        functools.partial(_layer2_kernel, binary=binary),
        out_shape=jax.ShapeDtypeStruct((n, n_out), jnp.float32),
        grid=grid,
        in_specs=[
            a_spec(1, True),                                 # int8 A tile
            pl.BlockSpec((tk, n_out), lambda i, k: (k, 0)),  # S2 k-block
            pl.BlockSpec((tm, n_out), lambda i, k: (i, 0)),  # S2 row block (self loop)
            pl.BlockSpec((tm, 1), lambda i, k: (i, 0)),      # dinv row block
            pl.BlockSpec((1, n_out), lambda i, k: (0, 0)),   # b2
        ],
        out_specs=pl.BlockSpec((tm, n_out), lambda i, k: (i, 0)),
        scratch_shapes=[pltpu.VMEM((tm, n_out), jnp.float32)],
        compiler_params=cparams,
        cost_estimate=pl.CostEstimate(
            flops=2 * n * n * n_out + 4 * n * n_out,
            transcendentals=n * n_out,
            bytes_accessed=n * n + 3 * n * n_out * 4,
        ),
    )(a8, s2, s2, dinv, b2)

    return out


def init_gcn_params(key, n_features, n_classes, n_filter=64):
    """Deterministic glorot-uniform weights + zero biases (GCNConv defaults)."""
    if n_classes == 2:
        n_out, binary = 1, True
    else:
        n_out, binary = n_classes, False

    k1, k2 = jax.random.split(key)

    def glorot(k, fan_in, fan_out):
        limit = jnp.sqrt(6.0 / (fan_in + fan_out))
        return jax.random.uniform(k, (fan_in, fan_out), jnp.float32, -limit, limit)

    params = {
        "w1": glorot(k1, n_features, n_filter),
        "b1": jnp.zeros((1, n_filter), jnp.float32),
        "w2": glorot(k2, n_filter, n_out),
        "b2": jnp.zeros((1, n_out), jnp.float32),
    }
    return params, binary


def gcn_reference(X, A, params, *, binary):
    """Pure-JAX f32 reference of the same forward math (for validation)."""
    deg = jnp.sum(A, axis=1, keepdims=True) + 1.0
    dinv = lax.rsqrt(deg)

    def norm_agg(h):
        s = dinv * h
        return dinv * (A @ s + s)

    h1 = jnp.maximum(norm_agg(X @ params["w1"]) + params["b1"], 0.0)
    z = norm_agg(h1) @ params["w2"] + params["b2"]
    if binary:
        return jax.nn.sigmoid(z)
    return jax.nn.softmax(z, axis=1)


# TODO(synk): dropout with p > 0 (training mode) and activation='linear' are not
#             wired in; module defaults (p=0, relu, eval) are what the kernels compute.
# TODO(synk): int8 A storage is exact only for 0/1 unweighted adjacency; weighted
#             graphs need bf16 (v5e/v6e) / fp8 (v7x) or f32 storage.

if __name__ == "__main__":
    def run_case(n_nodes, n_features, n_classes, n_filter, *, force_stream=False):
        key = jax.random.PRNGKey(0)
        kx, ka, kp = jax.random.split(key, 3)

        # Node features.
        X = jax.random.normal(kx, (n_nodes, n_features), jnp.float32)

        # Random symmetric 0/1 adjacency (no self loops; kernels add them via deg+1).
        upper = (jax.random.uniform(ka, (n_nodes, n_nodes)) < 0.05).astype(jnp.float32)
        upper = jnp.triu(upper, k=1)
        A = upper + upper.T

        params, binary = init_gcn_params(kp, n_features, n_classes, n_filter)

        kwargs = {"s_resident_bytes": 0} if force_stream else {}
        fwd = jax.jit(functools.partial(gcn_forward, binary=binary, **kwargs))
        out = jax.block_until_ready(fwd(X, A, params))

        n_out = 1 if binary else n_classes
        assert out.shape == (n_nodes, n_out), out.shape
        if not binary:
            # Exact division in the head -> rows sum to 1 within f32 rounding.
            assert jnp.allclose(jnp.sum(out, axis=1), 1.0, atol=1e-4)
        ref = gcn_reference(X, A, params, binary=binary)
        err = float(jnp.max(jnp.abs(out - ref)))
        assert err < 5e-2, err   # bf16 S1 / bf16 MXU aggregation => loose tolerance

    run_case(128, 16, 4, 64)                       # resident-S path, softmax head
    run_case(128, 16, 2, 64)                       # sigmoid head (n_classes == 2)
    run_case(2048, 16, 4, 64, force_stream=True)   # streamed-S path + Buffered(3)
    print("KERNEL_OK")
</pallas_src>

<mosaic_0001>
module attributes {stable_mosaic.version = 11 : i64} {
  func.func @_layer1_resident_kernel(%arg0: i32, %arg1: i32, %arg2: memref<64x128xi8, #tpu.memory_space<vmem>>, %arg3: memref<128x64xbf16, #tpu.memory_space<vmem>>, %arg4: memref<64x1xf32, #tpu.memory_space<vmem>>, %arg5: memref<1x64xf32, #tpu.memory_space<vmem>>, %arg6: memref<64x4xf32, #tpu.memory_space<vmem>>, %arg7: memref<64x4xf32, #tpu.memory_space<vmem>>, %arg8: memref<64x64xf32, #tpu.memory_space<vmem>>) attributes {dimension_semantics = [#tpu.dimension_semantics<parallel>, #tpu.dimension_semantics<arbitrary>], iteration_bounds = array<i64: 2, 1>, scalar_prefetch = 0 : i64, scratch_operands = 1 : i64, tpu.core_type = #tpu.core_type<tc>, window_params = [{transform_indices = @transform_0, window_bounds = array<i64: 64, 128>}, {pipeline_mode = #tpu.pipeline_mode<synchronous>, transform_indices = @transform_1, window_bounds = array<i64: 128, 64>}, {transform_indices = @transform_2, window_bounds = array<i64: 64, 1>}, {pipeline_mode = #tpu.pipeline_mode<synchronous>, transform_indices = @transform_3, window_bounds = array<i64: 1, 64>}, {pipeline_mode = #tpu.pipeline_mode<synchronous>, transform_indices = @transform_4, window_bounds = array<i64: 64, 4>}, {transform_indices = @transform_5, window_bounds = array<i64: 64, 4>}]} {
    %c0_i32 = arith.constant 0 : i32
    %0 = arith.cmpi eq, %arg1, %c0_i32 : i32
    %1 = arith.extui %0 : i1 to i32
    %c0_i32_0 = arith.constant 0 : i32
    %2 = arith.cmpi ne, %1, %c0_i32_0 : i32
    scf.if %2 {
      %c64_i32 = arith.constant 64 : i32
      %16 = arith.muli %arg0, %c64_i32 : i32
      %17 = tpu.assume_multiple %16, 64 : i32
      %18 = arith.index_cast %17 : i32 to index
      %c0_9 = arith.constant 0 : index
      %19 = vector.load %arg3[%18, %c0_9] : memref<128x64xbf16, #tpu.memory_space<vmem>>, vector<64x64xbf16>
      %20 = arith.extf %19 : vector<64x64xbf16> to vector<64x64xf32>
      %c0_10 = arith.constant 0 : index
      %c0_11 = arith.constant 0 : index
      %21 = vector.load %arg8[%c0_10, %c0_11] : memref<64x64xf32, #tpu.memory_space<vmem>>, vector<64x64xf32>
      tpu.vector_store %arg8[%c0_10, %c0_11], %20 {strides = array<i32>} : memref<64x64xf32, #tpu.memory_space<vmem>>, vector<64x64xf32>,
    } else {
    }
    %c128_i32 = arith.constant 128 : i32
    %3 = arith.muli %arg1, %c128_i32 : i32
    %4 = tpu.assume_multiple %3, 128 : i32
    %5 = arith.index_cast %4 : i32 to index
    %c0 = arith.constant 0 : index
    %6 = vector.load %arg3[%5, %c0] : memref<128x64xbf16, #tpu.memory_space<vmem>>, vector<128x64xbf16>
    %c0_1 = arith.constant 0 : index
    %c0_2 = arith.constant 0 : index
    %7 = vector.load %arg8[%c0_1, %c0_2] : memref<64x64xf32, #tpu.memory_space<vmem>>, vector<64x64xf32>
    %c0_3 = arith.constant 0 : index
    %c0_4 = arith.constant 0 : index
    %8 = vector.load %arg2[%c0_3, %c0_4] : memref<64x128xi8, #tpu.memory_space<vmem>>, vector<64x128xi8>
    %9 = arith.sitofp %8 : vector<64x128xi8> to vector<64x128xbf16>
    %cst = arith.constant dense<0.000000e+00> : vector<64x64xf32>
    %10 = tpu.matmul %9, %6, %cst {dimension_numbers = #tpu.dot_dimension_numbers<[1], [0], [0], [1], [0, 0, 1, 1], [], []>} : vector<64x128xbf16>, vector<128x64xbf16>, vector<64x64xf32> -> vector<64x64xf32>
    %11 = arith.addf %7, %10 : vector<64x64xf32>
    %c0_5 = arith.constant 0 : index
    %c0_6 = arith.constant 0 : index
    %12 = vector.load %arg8[%c0_5, %c0_6] : memref<64x64xf32, #tpu.memory_space<vmem>>, vector<64x64xf32>
    tpu.vector_store %arg8[%c0_5, %c0_6], %11 {strides = array<i32>} : memref<64x64xf32, #tpu.memory_space<vmem>>, vector<64x64xf32>,
    %c0_i32_7 = arith.constant 0 : i32
    %13 = arith.cmpi eq, %arg1, %c0_i32_7 : i32
    %14 = arith.extui %13 : i1 to i32
    %c0_i32_8 = arith.constant 0 : i32
    %15 = arith.cmpi ne, %14, %c0_i32_8 : i32
    scf.if %15 {
      %c0_9 = arith.constant 0 : index
      %c0_10 = arith.constant 0 : index
      %16 = vector.load %arg4[%c0_9, %c0_10] : memref<64x1xf32, #tpu.memory_space<vmem>>, vector<64x1xf32>
      %c0_11 = arith.constant 0 : index
      %c0_12 = arith.constant 0 : index
      %17 = vector.load %arg8[%c0_11, %c0_12] : memref<64x64xf32, #tpu.memory_space<vmem>>, vector<64x64xf32>
      %18 = vector.broadcast %16 : vector<64x1xf32> to vector<64x64xf32>
      %19 = arith.mulf %18, %17 : vector<64x64xf32>
      %c0_13 = arith.constant 0 : index
      %c0_14 = arith.constant 0 : index
      %20 = vector.load %arg5[%c0_13, %c0_14] : memref<1x64xf32, #tpu.memory_space<vmem>>, vector<1x64xf32>
      %21 = vector.broadcast %20 : vector<1x64xf32> to vector<64x64xf32>
      %22 = arith.addf %19, %21 : vector<64x64xf32>
      %cst_15 = arith.constant 0.000000e+00 : f32
      %23 = vector.broadcast %cst_15 : f32 to vector<64x64xf32>
      %24 = arith.maximumf %22, %23 : vector<64x64xf32>
      %c0_16 = arith.constant 0 : index
      %c0_17 = arith.constant 0 : index
      %25 = vector.load %arg6[%c0_16, %c0_17] : memref<64x4xf32, #tpu.memory_space<vmem>>, vector<64x4xf32>
      %cst_18 = arith.constant dense<0.000000e+00> : vector<64x4xf32>
      %26 = tpu.matmul %24, %25, %cst_18 {dimension_numbers = #tpu.dot_dimension_numbers<[1], [0], [0], [1], [0, 0, 1, 1], [], []>} : vector<64x64xf32>, vector<64x4xf32>, vector<64x4xf32> -> vector<64x4xf32>
      %27 = vector.broadcast %16 : vector<64x1xf32> to vector<64x4xf32>
      %28 = arith.mulf %27, %26 : vector<64x4xf32>
      %c0_19 = arith.constant 0 : index
      %c0_20 = arith.constant 0 : index
      %29 = vector.load %arg7[%c0_19, %c0_20] : memref<64x4xf32, #tpu.memory_space<vmem>>, vector<64x4xf32>
      tpu.vector_store %arg7[%c0_19, %c0_20], %28 {strides = array<i32>} : memref<64x4xf32, #tpu.memory_space<vmem>>, vector<64x4xf32>,
    } else {
    }
    return
  }
  func.func @transform_0(%arg0: i32, %arg1: i32) -> (i32, i32) {
    %c0_i32 = arith.constant 0 : i32
    return %arg0, %arg1 : i32, i32
  }
  func.func @transform_1(%arg0: i32, %arg1: i32) -> (i32, i32) {
    %c0_i32 = arith.constant 0 : i32
    %c0_i32_0 = arith.constant 0 : i32
    %c0_i32_1 = arith.constant 0 : i32
    return %c0_i32, %c0_i32_0 : i32, i32
  }
  func.func @transform_2(%arg0: i32, %arg1: i32) -> (i32, i32) {
    %c0_i32 = arith.constant 0 : i32
    %c0_i32_0 = arith.constant 0 : i32
    return %arg0, %c0_i32 : i32, i32
  }
  func.func @transform_3(%arg0: i32, %arg1: i32) -> (i32, i32) {
    %c0_i32 = arith.constant 0 : i32
    %c0_i32_0 = arith.constant 0 : i32
    %c0_i32_1 = arith.constant 0 : i32
    return %c0_i32, %c0_i32_0 : i32, i32
  }
  func.func @transform_4(%arg0: i32, %arg1: i32) -> (i32, i32) {
    %c0_i32 = arith.constant 0 : i32
    %c0_i32_0 = arith.constant 0 : i32
    %c0_i32_1 = arith.constant 0 : i32
    return %c0_i32, %c0_i32_0 : i32, i32
  }
  func.func @transform_5(%arg0: i32, %arg1: i32) -> (i32, i32) {
    %c0_i32 = arith.constant 0 : i32
    %c0_i32_0 = arith.constant 0 : i32
    return %arg0, %c0_i32 : i32, i32
  }
}

module attributes {stable_mosaic.version = 11 : i64} {
  func.func @_prep_kernel(%arg0: i32, %arg1: i32, %arg2: memref<64x128xf32, #tpu.memory_space<vmem>>, %arg3: memref<64x16xf32, #tpu.memory_space<vmem>>, %arg4: memref<16x64xf32, #tpu.memory_space<vmem>>, %arg5: memref<64x128xi8, #tpu.memory_space<vmem>>, %arg6: memref<64x1xf32, #tpu.memory_space<vmem>>, %arg7: memref<64x64xbf16, #tpu.memory_space<vmem>>, %arg8: memref<64x1xf32, #tpu.memory_space<vmem>>) attributes {dimension_semantics = [#tpu.dimension_semantics<parallel>, #tpu.dimension_semantics<arbitrary>], iteration_bounds = array<i64: 2, 1>, scalar_prefetch = 0 : i64, scratch_operands = 1 : i64, tpu.core_type = #tpu.core_type<tc>, window_params = [{transform_indices = @transform_0, window_bounds = array<i64: 64, 128>}, {transform_indices = @transform_1, window_bounds = array<i64: 64, 16>}, {pipeline_mode = #tpu.pipeline_mode<synchronous>, transform_indices = @transform_2, window_bounds = array<i64: 16, 64>}, {transform_indices = @transform_3, window_bounds = array<i64: 64, 128>}, {transform_indices = @transform_4, window_bounds = array<i64: 64, 1>}, {transform_indices = @transform_5, window_bounds = array<i64: 64, 64>}]} {
    %c0 = arith.constant 0 : index
    %c0_0 = arith.constant 0 : index
    %0 = vector.load %arg2[%c0, %c0_0] : memref<64x128xf32, #tpu.memory_space<vmem>>, vector<64x128xf32>
    %1 = arith.fptosi %0 : vector<64x128xf32> to vector<64x128xi8>
    %c0_1 = arith.constant 0 : index
    %c0_2 = arith.constant 0 : index
    %2 = vector.load %arg5[%c0_1, %c0_2] : memref<64x128xi8, #tpu.memory_space<vmem>>, vector<64x128xi8>
    tpu.vector_store %arg5[%c0_1, %c0_2], %1 {strides = array<i32>} : memref<64x128xi8, #tpu.memory_space<vmem>>, vector<64x128xi8>,
    %c0_i32 = arith.constant 0 : i32
    %3 = arith.cmpi eq, %arg1, %c0_i32 : i32
    %4 = arith.extui %3 : i1 to i32
    %c0_i32_3 = arith.constant 0 : i32
    %5 = arith.cmpi ne, %4, %c0_i32_3 : i32
    scf.if %5 {
      %cst_10 = arith.constant 1.000000e+00 : f32
      %14 = vector.broadcast %cst_10 : f32 to vector<64x1xf32>
      %c0_11 = arith.constant 0 : index
      %c0_12 = arith.constant 0 : index
      %15 = vector.load %arg8[%c0_11, %c0_12] : memref<64x1xf32, #tpu.memory_space<vmem>>, vector<64x1xf32>
      tpu.vector_store %arg8[%c0_11, %c0_12], %14 {strides = array<i32>} : memref<64x1xf32, #tpu.memory_space<vmem>>, vector<64x1xf32>,
    } else {
    }
    %c0_4 = arith.constant 0 : index
    %c0_5 = arith.constant 0 : index
    %6 = vector.load %arg8[%c0_4, %c0_5] : memref<64x1xf32, #tpu.memory_space<vmem>>, vector<64x1xf32>
    %cst = arith.constant dense<0.000000e+00> : vector<64xf32>
    %7 = vector.multi_reduction <add>, %0, %cst [1] : vector<64x128xf32> to vector<64xf32>
    %8 = vector.shape_cast %7 : vector<64xf32> to vector<64x1xf32>
    %9 = arith.addf %6, %8 : vector<64x1xf32>
    %c0_6 = arith.constant 0 : index
    %c0_7 = arith.constant 0 : index
    %10 = vector.load %arg8[%c0_6, %c0_7] : memref<64x1xf32, #tpu.memory_space<vmem>>, vector<64x1xf32>
    tpu.vector_store %arg8[%c0_6, %c0_7], %9 {strides = array<i32>} : memref<64x1xf32, #tpu.memory_space<vmem>>, vector<64x1xf32>,
    %c0_i32_8 = arith.constant 0 : i32
    %11 = arith.cmpi eq, %arg1, %c0_i32_8 : i32
    %12 = arith.extui %11 : i1 to i32
    %c0_i32_9 = arith.constant 0 : i32
    %13 = arith.cmpi ne, %12, %c0_i32_9 : i32
    scf.if %13 {
      %c0_10 = arith.constant 0 : index
      %c0_11 = arith.constant 0 : index
      %14 = vector.load %arg8[%c0_10, %c0_11] : memref<64x1xf32, #tpu.memory_space<vmem>>, vector<64x1xf32>
      %15 = math.rsqrt %14 : vector<64x1xf32>
      %c0_12 = arith.constant 0 : index
      %c0_13 = arith.constant 0 : index
      %16 = vector.load %arg6[%c0_12, %c0_13] : memref<64x1xf32, #tpu.memory_space<vmem>>, vector<64x1xf32>
      tpu.vector_store %arg6[%c0_12, %c0_13], %15 {strides = array<i32>} : memref<64x1xf32, #tpu.memory_space<vmem>>, vector<64x1xf32>,
      %c0_14 = arith.constant 0 : index
      %c0_15 = arith.constant 0 : index
      %17 = vector.load %arg3[%c0_14, %c0_15] : memref<64x16xf32, #tpu.memory_space<vmem>>, vector<64x16xf32>
      %c0_16 = arith.constant 0 : index
      %c0_17 = arith.constant 0 : index
      %18 = vector.load %arg4[%c0_16, %c0_17] : memref<16x64xf32, #tpu.memory_space<vmem>>, vector<16x64xf32>
      %cst_18 = arith.constant dense<0.000000e+00> : vector<64x64xf32>
      %19 = tpu.matmul %17, %18, %cst_18 {dimension_numbers = #tpu.dot_dimension_numbers<[1], [0], [0], [1], [0, 0, 1, 1], [], []>} : vector<64x16xf32>, vector<16x64xf32>, vector<64x64xf32> -> vector<64x64xf32>
      %20 = vector.broadcast %15 : vector<64x1xf32> to vector<64x64xf32>
      %21 = arith.mulf %20, %19 : vector<64x64xf32>
      %22 = arith.truncf %21 : vector<64x64xf32> to vector<64x64xbf16>
      %c0_19 = arith.constant 0 : index
      %c0_20 = arith.constant 0 : index
      %23 = vector.load %arg7[%c0_19, %c0_20] : memref<64x64xbf16, #tpu.memory_space<vmem>>, vector<64x64xbf16>
      tpu.vector_store %arg7[%c0_19, %c0_20], %22 {strides = array<i32>} : memref<64x64xbf16, #tpu.memory_space<vmem>>, vector<64x64xbf16>,
    } else {
    }
    return
  }
  func.func @transform_0(%arg0: i32, %arg1: i32) -> (i32, i32) {
    %c0_i32 = arith.constant 0 : i32
    return %arg0, %arg1 : i32, i32
  }
  func.func @transform_1(%arg0: i32, %arg1: i32) -> (i32, i32) {
    %c0_i32 = arith.constant 0 : i32
    %c0_i32_0 = arith.constant 0 : i32
    return %arg0, %c0_i32 : i32, i32
  }
  func.func @transform_2(%arg0: i32, %arg1: i32) -> (i32, i32) {
    %c0_i32 = arith.constant 0 : i32
    %c0_i32_0 = arith.constant 0 : i32
    %c0_i32_1 = arith.constant 0 : i32
    return %c0_i32, %c0_i32_0 : i32, i32
  }
  func.func @transform_3(%arg0: i32, %arg1: i32) -> (i32, i32) {
    %c0_i32 = arith.constant 0 : i32
    return %arg0, %arg1 : i32, i32
  }
  func.func @transform_4(%arg0: i32, %arg1: i32) -> (i32, i32) {
    %c0_i32 = arith.constant 0 : i32
    %c0_i32_0 = arith.constant 0 : i32
    return %arg0, %c0_i32 : i32, i32
  }
  func.func @transform_5(%arg0: i32, %arg1: i32) -> (i32, i32) {
    %c0_i32 = arith.constant 0 : i32
    %c0_i32_0 = arith.constant 0 : i32
    return %arg0, %c0_i32 : i32, i32
  }
}

module attributes {stable_mosaic.version = 11 : i64} {
  func.func @_layer2_kernel(%arg0: i32, %arg1: i32, %arg2: memref<64x128xi8, #tpu.memory_space<vmem>>, %arg3: memref<128x4xf32, #tpu.memory_space<vmem>>, %arg4: memref<64x4xf32, #tpu.memory_space<vmem>>, %arg5: memref<64x1xf32, #tpu.memory_space<vmem>>, %arg6: memref<1x4xf32, #tpu.memory_space<vmem>>, %arg7: memref<64x4xf32, #tpu.memory_space<vmem>>, %arg8: memref<64x4xf32, #tpu.memory_space<vmem>>) attributes {dimension_semantics = [#tpu.dimension_semantics<parallel>, #tpu.dimension_semantics<arbitrary>], iteration_bounds = array<i64: 2, 1>, scalar_prefetch = 0 : i64, scratch_operands = 1 : i64, tpu.core_type = #tpu.core_type<tc>, window_params = [{transform_indices = @transform_0, window_bounds = array<i64: 64, 128>}, {transform_indices = @transform_1, window_bounds = array<i64: 128, 4>}, {transform_indices = @transform_2, window_bounds = array<i64: 64, 4>}, {transform_indices = @transform_3, window_bounds = array<i64: 64, 1>}, {pipeline_mode = #tpu.pipeline_mode<synchronous>, transform_indices = @transform_4, window_bounds = array<i64: 1, 4>}, {transform_indices = @transform_5, window_bounds = array<i64: 64, 4>}]} {
    %c0_i32 = arith.constant 0 : i32
    %0 = arith.cmpi eq, %arg1, %c0_i32 : i32
    %1 = arith.extui %0 : i1 to i32
    %c0_i32_0 = arith.constant 0 : i32
    %2 = arith.cmpi ne, %1, %c0_i32_0 : i32
    scf.if %2 {
      %c0_10 = arith.constant 0 : index
      %c0_11 = arith.constant 0 : index
      %14 = vector.load %arg4[%c0_10, %c0_11] : memref<64x4xf32, #tpu.memory_space<vmem>>, vector<64x4xf32>
      %c0_12 = arith.constant 0 : index
      %c0_13 = arith.constant 0 : index
      %15 = vector.load %arg8[%c0_12, %c0_13] : memref<64x4xf32, #tpu.memory_space<vmem>>, vector<64x4xf32>
      tpu.vector_store %arg8[%c0_12, %c0_13], %14 {strides = array<i32>} : memref<64x4xf32, #tpu.memory_space<vmem>>, vector<64x4xf32>,
    } else {
    }
    %c0 = arith.constant 0 : index
    %c0_1 = arith.constant 0 : index
    %3 = vector.load %arg8[%c0, %c0_1] : memref<64x4xf32, #tpu.memory_space<vmem>>, vector<64x4xf32>
    %c0_2 = arith.constant 0 : index
    %c0_3 = arith.constant 0 : index
    %4 = vector.load %arg2[%c0_2, %c0_3] : memref<64x128xi8, #tpu.memory_space<vmem>>, vector<64x128xi8>
    %5 = arith.sitofp %4 : vector<64x128xi8> to vector<64x128xbf16>
    %c0_4 = arith.constant 0 : index
    %c0_5 = arith.constant 0 : index
    %6 = vector.load %arg3[%c0_4, %c0_5] : memref<128x4xf32, #tpu.memory_space<vmem>>, vector<128x4xf32>
    %7 = arith.truncf %6 : vector<128x4xf32> to vector<128x4xbf16>
    %cst = arith.constant dense<0.000000e+00> : vector<64x4xf32>
    %8 = tpu.matmul %5, %7, %cst {dimension_numbers = #tpu.dot_dimension_numbers<[1], [0], [0], [1], [0, 0, 1, 1], [], []>} : vector<64x128xbf16>, vector<128x4xbf16>, vector<64x4xf32> -> vector<64x4xf32>
    %9 = arith.addf %3, %8 : vector<64x4xf32>
    %c0_6 = arith.constant 0 : index
    %c0_7 = arith.constant 0 : index
    %10 = vector.load %arg8[%c0_6, %c0_7] : memref<64x4xf32, #tpu.memory_space<vmem>>, vector<64x4xf32>
    tpu.vector_store %arg8[%c0_6, %c0_7], %9 {strides = array<i32>} : memref<64x4xf32, #tpu.memory_space<vmem>>, vector<64x4xf32>,
    %c0_i32_8 = arith.constant 0 : i32
    %11 = arith.cmpi eq, %arg1, %c0_i32_8 : i32
    %12 = arith.extui %11 : i1 to i32
    %c0_i32_9 = arith.constant 0 : i32
    %13 = arith.cmpi ne, %12, %c0_i32_9 : i32
    scf.if %13 {
      %c0_10 = arith.constant 0 : index
      %c0_11 = arith.constant 0 : index
      %14 = vector.load %arg5[%c0_10, %c0_11] : memref<64x1xf32, #tpu.memory_space<vmem>>, vector<64x1xf32>
      %c0_12 = arith.constant 0 : index
      %c0_13 = arith.constant 0 : index
      %15 = vector.load %arg8[%c0_12, %c0_13] : memref<64x4xf32, #tpu.memory_space<vmem>>, vector<64x4xf32>
      %16 = vector.broadcast %14 : vector<64x1xf32> to vector<64x4xf32>
      %17 = arith.mulf %16, %15 : vector<64x4xf32>
      %c0_14 = arith.constant 0 : index
      %c0_15 = arith.constant 0 : index
      %18 = vector.load %arg6[%c0_14, %c0_15] : memref<1x4xf32, #tpu.memory_space<vmem>>, vector<1x4xf32>
      %19 = vector.broadcast %18 : vector<1x4xf32> to vector<64x4xf32>
      %20 = arith.addf %17, %19 : vector<64x4xf32>
      %cst_16 = arith.constant dense<0xFF800000> : vector<64xf32>
      %21 = vector.multi_reduction <maximumf>, %20, %cst_16 [1] : vector<64x4xf32> to vector<64xf32>
      %22 = vector.shape_cast %21 : vector<64xf32> to vector<64x1xf32>
      %23 = vector.broadcast %22 : vector<64x1xf32> to vector<64x4xf32>
      %24 = arith.subf %20, %23 : vector<64x4xf32>
      %25 = math.exp %24 : vector<64x4xf32>
      %cst_17 = arith.constant dense<0.000000e+00> : vector<64xf32>
      %26 = vector.multi_reduction <add>, %25, %cst_17 [1] : vector<64x4xf32> to vector<64xf32>
      %27 = vector.shape_cast %26 : vector<64xf32> to vector<64x1xf32>
      %28 = vector.broadcast %27 : vector<64x1xf32> to vector<64x4xf32>
      %29 = arith.divf %25, %28 : vector<64x4xf32>
      %c0_18 = arith.constant 0 : index
      %c0_19 = arith.constant 0 : index
      %30 = vector.load %arg7[%c0_18, %c0_19] : memref<64x4xf32, #tpu.memory_space<vmem>>, vector<64x4xf32>
      tpu.vector_store %arg7[%c0_18, %c0_19], %29 {strides = array<i32>} : memref<64x4xf32, #tpu.memory_space<vmem>>, vector<64x4xf32>,
    } else {
    }
    return
  }
  func.func @transform_0(%arg0: i32, %arg1: i32) -> (i32, i32) {
    %c0_i32 = arith.constant 0 : i32
    return %arg0, %arg1 : i32, i32
  }
  func.func @transform_1(%arg0: i32, %arg1: i32) -> (i32, i32) {
    %c0_i32 = arith.constant 0 : i32
    %c0_i32_0 = arith.constant 0 : i32
    return %arg1, %c0_i32 : i32, i32
  }
  func.func @transform_2(%arg0: i32, %arg1: i32) -> (i32, i32) {
    %c0_i32 = arith.constant 0 : i32
    %c0_i32_0 = arith.constant 0 : i32
    return %arg0, %c0_i32 : i32, i32
  }
  func.func @transform_3(%arg0: i32, %arg1: i32) -> (i32, i32) {
    %c0_i32 = arith.constant 0 : i32
    %c0_i32_0 = arith.constant 0 : i32
    return %arg0, %c0_i32 : i32, i32
  }
  func.func @transform_4(%arg0: i32, %arg1: i32) -> (i32, i32) {
    %c0_i32 = arith.constant 0 : i32
    %c0_i32_0 = arith.constant 0 : i32
    %c0_i32_1 = arith.constant 0 : i32
    return %c0_i32, %c0_i32_0 : i32, i32
  }
  func.func @transform_5(%arg0: i32, %arg1: i32) -> (i32, i32) {
    %c0_i32 = arith.constant 0 : i32
    %c0_i32_0 = arith.constant 0 : i32
    return %arg0, %c0_i32 : i32, i32
  }
}

</mosaic_0001>

<bundles_post_ra>
// kernel: gcn_forward.5
= control target key start
LH: loop header
LB: loop body
LE: loop exit
PB: predicated region body
PF: predicated region fallthrough
CT: control target
= control target key end

     0   :  { %s927_s18 = smov 0   ;;  %s929_s19 = smov 0   ;;  %s1104_s0 = inlined_call_operand.vmem [shape: s8[128,128], index: 0, kind: input, shape index: {}]   ;;  %s1105_s1 = inlined_call_operand.vmem [shape: f32[128,4], index: 1, kind: input, shape index: {}, may-alias: {1,2}]   ;;  %s1106_s2 = inlined_call_operand.vmem [shape: f32[128,4], index: 2, kind: input, shape index: {}, may-alias: {1,2}]   ;;  %s1107_s3 = inlined_call_operand.vmem [shape: f32[128,1], index: 3, kind: input, shape index: {}]   ;;  %s1108_s4 = inlined_call_operand.vmem [shape: f32[1,4], index: 4, kind: input, shape index: {}]   ;;  %s1109_s5 = inlined_call_operand.vmem [shape: f32[128,4], index: 5, kind: output, shape index: {}]  }
   0x1   :  { %s931_s20 = smov 0  }
   0x2 LB: > { %s27_s21 = sadd.s32 1, %s890_s19  ;;  %p749_p0 = scmp.ge.s32.totalorder %s894_s20, 1  ;;  %s894_s20 = sphi %s931_s20, %s15_s20   ;;  %s890_s19 = sphi %s929_s19, %s1111_s19   ;;  %s886_s18 = sphi %s927_s18, %s1110_s18  }
   0x3   : > { %p29_p1 = scmp.ge.s32.totalorder %s27_s21, 2  ;;  %p238_p2 = scmp.lt.s32.totalorder %s894_s20, 3 }
   0x5   : > { %s1113_s21 = smov (%p29_p1, %s27_s21), 0  ;;  %p239_p3 = pnand %p749_p0, %p238_p2 }
   0x6   : > { %v353_v0 = vld [vmem:[%s1105_s1] sm:$0xff] (!%p239_p3)  ;;  %v354_v1 = vld [vmem:[%s1105_s1 + $0x8] sm:$0xff] (!%p239_p3)  ;;  %v355_v2 = vld [vmem:[%s1105_s1 + $0x10] sm:$0xff] (!%p239_p3)  ;;  %s750_s28 = sshll.u32 (!%p239_p3), %s886_s18, 1  ;;  %s752_s29 = sshll.u32 (!%p239_p3), %s886_s18, 3  ;;  %v896_v5 = vmov (!%p239_p3), 0  }
   0x7   : > { %242 = sbr.rel (%p239_p3) target bundleno = 602 (0x25a), region = 40  ;;  %v369_v3 = vpack.c.bf16 (!%p239_p3), %v354_v1, %v353_v0  ;;  %v356_v4 = vld [vmem:[%s1105_s1 + $0x18] sm:$0xff] (!%p239_p3)  ;;  %p285_p4 = scmp.lt.s32.totalorder (!%p239_p3), %s750_s28, 3  ;;  %839 = vset.pattern.permute.xlu1 (!%p239_p3), %v896_v5  ;;  %838 = vset.pattern.permute.xlu0 (!%p239_p3), %v896_v5  ;;  %v357_v7 = vld [vmem:[%s1105_s1 + $0x20] sm:$0xff] (!%p239_p3)  ;;  %v358_v8 = vld [vmem:[%s1105_s1 + $0x28] sm:$0xff] (!%p239_p3)  ;;  %vm330_vm0 = vcmask (!%p239_p3), 31744  }
   0x8   : > { %p300_p5 = scmp.lt.s32.totalorder (!%p239_p3), %s752_s29, 15  ;;  %v370_v6 = vpack.c.bf16 (!%p239_p3), %v356_v4, %v355_v2  ;;  %v371_v9 = vpack.c.bf16 (!%p239_p3), %v358_v8, %v357_v7  ;;  %v359_v10 = vld [vmem:[%s1105_s1 + $0x30] sm:$0xff] (!%p239_p3)  ;;  %v360_v11 = vld [vmem:[%s1105_s1 + $0x38] sm:$0xff] (!%p239_p3)  ;;  %v361_v19 = vld [vmem:[%s1105_s1 + $0x40] sm:$0xff] (!%p239_p3) }
   0x9   : > { %773 = vmatprep.subr.bf16.mxu0 (!%p239_p3), %v369_v3  ;;  %797 = vmatprep.subr.bf16.mxu1 (!%p239_p3), %v369_v3  ;;  %v372_v18 = vpack.c.bf16 (!%p239_p3), %v360_v11, %v359_v10  ;;  %v362_v20 = vld [vmem:[%s1105_s1 + $0x48] sm:$0xff] (!%p239_p3)  ;;  %v363_v25 = vld [vmem:[%s1105_s1 + $0x50] sm:$0xff] (!%p239_p3)  ;;  %v364_v26 = vld [vmem:[%s1105_s1 + $0x58] sm:$0xff] (!%p239_p3) }
   0xa   : > { %774 = vmatpush3.bf16.msra.mxu0 (!%p239_p3), %v369_v3  ;;  %805 = vmatpush3.bf16.msra.mxu1 (!%p239_p3), %v369_v3  ;;  %v373_v24 = vpack.c.bf16 (!%p239_p3), %v362_v20, %v361_v19  ;;  %v374_v29 = vpack.c.bf16 (!%p239_p3), %v364_v26, %v363_v25  ;;  %v365_v30 = vld [vmem:[%s1105_s1 + $0x60] sm:$0xff] (!%p239_p3)  ;;  %v366_v31 = vld [vmem:[%s1105_s1 + $0x68] sm:$0xff] (!%p239_p3)  ;;  %v367_v35 = vld [vmem:[%s1105_s1 + $0x70] sm:$0xff] (!%p239_p3) }
   0xb   : > { %775 = vmatprep.subr.bf16.mxu0 (!%p239_p3), %v370_v6  ;;  %798 = vmatprep.subr.bf16.mxu1 (!%p239_p3), %v370_v6  ;;  %v375_v34 = vpack.c.bf16 (!%p239_p3), %v366_v31, %v365_v30  ;;  %v368_v36 = vld [vmem:[%s1105_s1 + $0x78] sm:$0xff] (!%p239_p3) }
   0xc   : > { %v376_v37 = vpack.c.bf16 (!%p239_p3), %v368_v36, %v367_v35 }
   0xe   : > { %s1115_s28 = smov (!%p285_p4, %s750_s28), 3  ;;  %s1117_s29 = smov (!%p300_p5, %s752_s29), 15  ;;  %776 = vmatpush3.bf16.msra.mxu0 %v370_v6  ;;  %806 = vmatpush3.bf16.msra.mxu1 %v370_v6 }
   0xf   : > { %s751_s11 = sshll.u32 %s1115_s28, 3  ;;  %s976_s22 = sshll.u32 %s1117_s29, 3  ;;  %777 = vmatprep.subr.bf16.mxu0 %v371_v9  ;;  %799 = vmatprep.subr.bf16.mxu1 %v371_v9 }
  0x10   : > { %s291_s18 = scalar_lea.vmem %s1104_s0, %s751_s11  ;;  %s986_s25 = scalar_lea.vmem %s1107_s3, %s976_s22 }
  0x11   : > { %v978_v12 = vld [vmem:[%s291_s18] sm:$0xff]  ;;  %v980_v13 = vld [vmem:[%s291_s18 + $0x8] sm:$0xff]  ;;  %v464_v16 = vld [vmem:[%s986_s25 + $0x10] sm:$0xff]  ;;  %s995_s28 = scalar_lea.vmem %s1106_s2, %s976_s22 }
  0x12   : > { %v349_v14 = vunpack.c.l.s8.bf16 %v978_v12  ;;  %v351_v15 = vunpack.c.l.s8.bf16 %v980_v13  ;;  %v462_v17 = vld [vmem:[%s986_s25] sm:$0xff]  ;;  %v324_v21 = vld [vmem:[%s995_s28 + $0x10] sm:$0xff]  ;;  %490 = vperm.xlu1 %839, %v464_v16   ;;  %778 = vmatpush3.bf16.msra.mxu0 %v371_v9  ;;  %v465_v22 = vld [vmem:[%s986_s25 + $0x18] sm:$0xff]  ;;  %v350_v38 = vunpack.c.h.s8.bf16 %v978_v12  ;;  %v352_v39 = vunpack.c.h.s8.bf16 %v980_v13 }
  0x13   : > { %480 = vperm.xlu0 %838, %v462_v17   ;;  %333 = vst.msk [vmem:[#allocation2 + $0x10] sm:$0xff] %vm330_vm0, %v324_v21  ;;  %807 = vmatpush3.bf16.msra.mxu1 %v371_v9  ;;  %v463_v23 = vld [vmem:[%s986_s25 + $0x8] sm:$0xff]  ;;  %v466_v28 = vld [vmem:[%s986_s25 + $0x20] sm:$0xff]  ;;  %v469_v32 = vld [vmem:[%s986_s25 + $0x38] sm:$0xff] }
  0x14   : > { %789 = vmatprep.mubr.bf16.mxu0 %v349_v14  ;;  %793 = vmatprep.mubr.bf16.mxu1 %v351_v15  ;;  %v467_v27 = vld [vmem:[%s986_s25 + $0x28] sm:$0xff]  ;;  %v468_v33 = vld [vmem:[%s986_s25 + $0x30] sm:$0xff]  ;;  %v322_v41 = vld [vmem:[%s995_s28] sm:$0xff] }
  0x15   : > { %779 = vmatprep.subr.bf16.mxu0 %v372_v18  ;;  %800 = vmatprep.subr.bf16.mxu1 %v372_v18  ;;  %v328_v40 = vld [vmem:[%s995_s28 + $0x30] sm:$0xff]  ;;  %v326_v42 = vld [vmem:[%s995_s28 + $0x20] sm:$0xff]  ;;  %331 = vst.msk [vmem:[#allocation2] sm:$0xff] %vm330_vm0, %v322_v41  ;;  %v325_v43 = vld [vmem:[%s995_s28 + $0x18] sm:$0xff] }
  0x16   : > { %495 = vperm.xlu1 %839, %v465_v22   ;;  %780 = vmatpush3.bf16.msra.mxu0 %v372_v18  ;;  %337 = vst.msk [vmem:[#allocation2 + $0x30] sm:$0xff] %vm330_vm0, %v328_v40  ;;  %335 = vst.msk [vmem:[#allocation2 + $0x20] sm:$0xff] %vm330_vm0, %v326_v42  ;;  %v329_v44 = vld [vmem:[%s995_s28 + $0x38] sm:$0xff]  ;;  %v323_v45 = vld [vmem:[%s995_s28 + $0x8] sm:$0xff] }
  0x17   : > { %485 = vperm.xlu0 %838, %v463_v23   ;;  %808 = vmatpush3.bf16.msra.mxu1 %v372_v18  ;;  %334 = vst.msk [vmem:[#allocation2 + $0x18] sm:$0xff] %vm330_vm0, %v325_v43  ;;  %338 = vst.msk [vmem:[#allocation2 + $0x38] sm:$0xff] %vm330_vm0, %v329_v44  ;;  %v327_v46 = vld [vmem:[%s995_s28 + $0x28] sm:$0xff]  ;;  %v758_v13 = vld [vmem:[%s1108_s4] ss:$0 sm:$0xff]  ;;  %s1077_s28 = scalar_lea.vmem %s1109_s5, %s976_s22 }
  0x18   : > { %781 = vmatprep.subr.bf16.mxu0 %v373_v24  ;;  %801 = vmatprep.subr.bf16.mxu1 %v373_v24  ;;  %332 = vst.msk [vmem:[#allocation2 + $0x8] sm:$0xff] %vm330_vm0, %v323_v45  ;;  %336 = vst.msk [vmem:[#allocation2 + $0x28] sm:$0xff] %vm330_vm0, %v327_v46 }
  0x1a   : > { %505 = vperm.xlu1 %839, %v467_v27   ;;  %782 = vmatpush3.bf16.msra.mxu0 %v373_v24  ;;  %v341_v48 = vld [vmem:[#allocation2 + $0x10] sm:$0xff] }
  0x1b   : > { %500 = vperm.xlu0 %838, %v466_v28   ;;  %809 = vmatpush3.bf16.msra.mxu1 %v373_v24 }
  0x1c   : > { %783 = vmatprep.subr.bf16.mxu0 %v374_v29  ;;  %802 = vmatprep.subr.bf16.mxu1 %v374_v29  ;;  %v339_v50 = vld [vmem:[#allocation2] sm:$0xff] }
  0x1d   : > { %v345_v49 = vld [vmem:[#allocation2 + $0x30] sm:$0xff]  ;;  %v343_v51 = vld [vmem:[#allocation2 + $0x20] sm:$0xff] }
  0x1e   : > { %515 = vperm.xlu1 %839, %v469_v32   ;;  %784 = vmatpush3.bf16.msra.mxu0 %v374_v29  ;;  %v342_v55 = vld [vmem:[#allocation2 + $0x18] sm:$0xff] }
  0x1f   : > { %510 = vperm.xlu0 %838, %v468_v33   ;;  %810 = vmatpush3.bf16.msra.mxu1 %v374_v29  ;;  %v346_v56 = vld [vmem:[#allocation2 + $0x38] sm:$0xff]  ;;  %v340_v61 = vld [vmem:[#allocation2 + $0x8] sm:$0xff] }
  0x20   : > { %785 = vmatprep.subr.bf16.mxu0 %v375_v34  ;;  %803 = vmatprep.subr.bf16.mxu1 %v375_v34  ;;  %v344_v62 = vld [vmem:[#allocation2 + $0x28] sm:$0xff] }
  0x22   : > { %786 = vmatpush3.bf16.msra.mxu0 %v375_v34 }
  0x23   : > { %811 = vmatpush3.bf16.msra.mxu1 %v375_v34  ;;  %787 = vmatprep.subr.bf16.mxu0 %v376_v37 }
  0x24   : > { %804 = vmatprep.subr.bf16.mxu1 %v376_v37 }
  0x26   : > { %788 = vmatpush3.bf16.msra.mxu0 %v376_v37 }
  0x27   : > { %812 = vmatpush3.bf16.msra.mxu1 %v376_v37 }
  0x29   : > { %790 = vmatmul.mubr.bf16.vlgmr.msra.gmra.mrb[0].mxu0 %v350_v38 }
  0x2a   : > { %794 = vmatmul.mubr.bf16.vlgmr.msra.gmra.mrb[0].mxu1 %v352_v39 }
  0x91   : > { %v491_v7 = vpop.permute.xlu1 %490 }
  0x92   : > { %v481_v47 = vpop.permute.xlu0 %480 }
  0x95   : > { %v496_v11 = vpop.permute.xlu1 %495 }
  0x96   : > { %v486_v52 = vpop.permute.xlu0 %485 }
  0x99   : > { %v506_v29 = vpop.permute.xlu1 %505 }
  0x9a   : > { %v501_v10 = vpop.permute.xlu0 %500 }
  0x9d   : > { %v516_v40 = vpop.permute.xlu1 %515 }
  0x9e   : > { %v511_v20 = vpop.permute.xlu0 %510 }
  0xfc   : > { %v791_v53 = vpop.f32.mrb[0].mxu0 }
  0xfd   : > { %v795_v54 = vpop.f32.mrb[0].mxu1  ;;  %v444_v57 = vadd.f32 %v791_v53, %v341_v48  ;;  %v411_v59 = vpop.f32.mrb[1].mxu0 }
  0xfe   : > { %v448_v58 = vadd.f32 %v795_v54, %v345_v49  ;;  %v427_v60 = vpop.f32.mrb[1].mxu1  ;;  %v442_v63 = vadd.f32 %v411_v59, %v339_v50  ;;  %v792_v1 = vpop.f32.mrb[2].mxu0 }
  0xff   : > { %v446_v0 = vadd.f32 %v427_v60, %v343_v51  ;;  %v796_v2 = vpop.f32.mrb[2].mxu1  ;;  %453 = vst.msk [vmem:[#allocation2 + $0x10] sm:$0xff] %vm330_vm0, %v444_v57  ;;  %v445_v3 = vadd.f32 %v792_v1, %v342_v55  ;;  %v414_v5 = vpop.f32.mrb[3].mxu0 }
 0x100   : > { %457 = vst.msk [vmem:[#allocation2 + $0x30] sm:$0xff] %vm330_vm0, %v448_v58  ;;  %v449_v4 = vadd.f32 %v796_v2, %v346_v56  ;;  %v430_v6 = vpop.f32.mrb[3].mxu1  ;;  %451 = vst.msk [vmem:[#allocation2] sm:$0xff] %vm330_vm0, %v442_v63  ;;  %v443_v8 = vadd.f32 %v414_v5, %v340_v61 }
 0x101   : > { %455 = vst.msk [vmem:[#allocation2 + $0x20] sm:$0xff] %vm330_vm0, %v446_v0  ;;  %v447_v9 = vadd.f32 %v430_v6, %v344_v62  ;;  %454 = vst.msk [vmem:[#allocation2 + $0x18] sm:$0xff] %vm330_vm0, %v445_v3 }
 0x102   : > { %458 = vst.msk [vmem:[#allocation2 + $0x38] sm:$0xff] %vm330_vm0, %v449_v4  ;;  %452 = vst.msk [vmem:[#allocation2 + $0x8] sm:$0xff] %vm330_vm0, %v443_v8 }
 0x103   : > { %456 = vst.msk [vmem:[#allocation2 + $0x28] sm:$0xff] %vm330_vm0, %v447_v9 }
 0x106   : > { %v472_v12 = vld [vmem:[#allocation2 + $0x10] sm:$0xff] }
 0x107   : > { %v520_v15 = vmul.f32 %v491_v7, %v472_v12  ;;  %v470_v16 = vld [vmem:[#allocation2] sm:$0xff]  ;;  %v476_v21 = vld [vmem:[#allocation2 + $0x30] sm:$0xff] }
 0x108   : > { %v474_v14 = vld [vmem:[#allocation2 + $0x20] sm:$0xff]  ;;  %v518_v18 = vmul.f32 %v481_v47, %v470_v16  ;;  %v473_v19 = vld [vmem:[#allocation2 + $0x18] sm:$0xff]  ;;  %v524_v31 = vmul.f32 %v511_v20, %v476_v21 }
 0x109   : > { %v522_v17 = vmul.f32 %v501_v10, %v474_v14  ;;  %v535_v22 = vadd.f32 %v758_v13, %v520_v15  ;;  %v471_v23 = vld [vmem:[#allocation2 + $0x8] sm:$0xff]  ;;  %v521_v28 = vmul.f32 %v496_v11, %v473_v19  ;;  %v477_v37 = vld [vmem:[#allocation2 + $0x38] sm:$0xff] }
 0x10a   : > { %v519_v25 = vmul.f32 %v486_v52, %v471_v23  ;;  %v533_v27 = vadd.f32 %v758_v13, %v518_v18  ;;  %v475_v30 = vld [vmem:[#allocation2 + $0x28] sm:$0xff]  ;;  %v539_v39 = vadd.f32 %v758_v13, %v524_v31  ;;  %v525_v41 = vmul.f32 %v516_v40, %v477_v37 }
 0x10b   : > { %v537_v24 = vadd.f32 %v758_v13, %v522_v17  ;;  %v547_v26 = vsel %vm330_vm0, %v535_v22, -inf  ;;  %v523_v34 = vmul.f32 %v506_v29, %v475_v30  ;;  %v536_v36 = vadd.f32 %v758_v13, %v521_v28 }
 0x10c   : > { %548 = vmax.xlane.f32.xlu0 %v547_v26  ;;  %v534_v33 = vadd.f32 %v758_v13, %v519_v25  ;;  %v541_v35 = vsel %vm330_vm0, %v533_v27, -inf  ;;  %v559_v44 = vsel %vm330_vm0, %v539_v39, -inf  ;;  %v540_v46 = vadd.f32 %v758_v13, %v525_v41 }
 0x10d   : > { %v553_v32 = vsel %vm330_vm0, %v537_v24, -inf  ;;  %v550_v42 = vsel %vm330_vm0, %v536_v36, -inf  ;;  %v538_v43 = vadd.f32 %v758_v13, %v523_v34 }
 0x10e   : > { %554 = vmax.xlane.f32.xlu1 %v553_v32  ;;  %v544_v38 = vsel %vm330_vm0, %v534_v33, -inf  ;;  %v562_v47 = vsel %vm330_vm0, %v540_v46, -inf }
 0x10f   : > { %v556_v45 = vsel %vm330_vm0, %v538_v43, -inf }
 0x110   : > { %542 = vmax.xlane.f32.xlu0 %v541_v35 }
 0x112   : > { %545 = vmax.xlane.f32.xlu1 %v544_v38 }
 0x114   : > { %551 = vmax.xlane.f32.xlu0 %v550_v42 }
 0x116   : > { %560 = vmax.xlane.f32.xlu1 %v559_v44 }
 0x118   : > { %557 = vmax.xlane.f32.xlu0 %v556_v45 }
 0x11c   : > { %563 = vmax.xlane.f32.xlu0 %v562_v47 }
 0x199   : > { %v549_v48 = vpop.xlane.xlu0 %548 }
 0x19a   : > { %v567_v49 = vsub.f32 %v535_v22, %v549_v48 }
 0x19b   : > { %v555_v50 = vpop.xlane.xlu1 %554 }
 0x19c   : > { %v577_v51 = vmul.f32 1.442695, %v567_v49  ;;  %v569_v52 = vsub.f32 %v537_v24, %v555_v50 }
 0x19d   : > { %v543_v53 = vpop.xlane.xlu0 %542 }
 0x19e   : > { %840 = vpow2.f32 %v577_v51  ;;  %v565_v54 = vsub.f32 %v533_v27, %v543_v53  ;;  %v581_v57 = vmul.f32 1.442695, %v569_v52 }
 0x19f   : > { %v546_v55 = vpop.xlane.xlu1 %545 }
 0x1a0   : > { %v566_v56 = vsub.f32 %v534_v33, %v546_v55  ;;  %v573_v58 = vmul.f32 1.442695, %v565_v54 }
 0x1a1   : > { %v552_v59 = vpop.xlane.xlu0 %551 }
 0x1a2   : > { %842 = vpow2.f32 %v573_v58  ;;  %v568_v60 = vsub.f32 %v536_v36, %v552_v59  ;;  %v575_v62 = vmul.f32 1.442695, %v566_v56 }
 0x1a3   : > { %v561_v61 = vpop.xlane.xlu1 %560  ;;  %844 = vpow2.f32 %v581_v57 }
 0x1a4   : > { %v571_v63 = vsub.f32 %v539_v39, %v561_v61  ;;  %v579_v0 = vmul.f32 1.442695, %v568_v60 }
 0x1a5   : > { %v558_v2 = vpop.xlane.xlu0 %557 }
 0x1a6   : > { %v585_v1 = vmul.f32 1.442695, %v571_v63  ;;  %846 = vpow2.f32 %v579_v0  ;;  %v570_v3 = vsub.f32 %v538_v43, %v558_v2 }
 0x1a7   : > { %848 = vpow2.f32 %v575_v62 }
 0x1a8   : > { %v841_v4 = vpop.eup %840  ;;  %850 = vpow2.f32 %v585_v1  ;;  %v583_v5 = vmul.f32 1.442695, %v570_v3 }
 0x1a9   : > { %v564_v6 = vpop.xlane.xlu0 %563  ;;  %v595_v7 = vsel %vm330_vm0, %v841_v4, 0.0 }
 0x1aa   : > { %v572_v8 = vsub.f32 %v540_v46, %v564_v6  ;;  %596 = vadd.xlane.f32.xlu1 %v595_v7  ;;  %852 = vpow2.f32 %v583_v5 }
 0x1ac   : > { %v843_v9 = vpop.eup %842  ;;  %v587_v10 = vmul.f32 1.442695, %v572_v8 }
 0x1ad   : > { %v589_v11 = vsel %vm330_vm0, %v843_v9, 0.0  ;;  %v845_v12 = vpop.eup %844 }
 0x1ae   : > { %590 = vadd.xlane.f32.xlu1 %v589_v11  ;;  %854 = vpow2.f32 %v587_v10  ;;  %v601_v16 = vsel %vm330_vm0, %v845_v12, 0.0 }
 0x1b0   : > { %v847_v13 = vpop.eup %846 }
 0x1b1   : > { %v849_v14 = vpop.eup %848  ;;  %v598_v15 = vsel %vm330_vm0, %v847_v13, 0.0 }
 0x1b2   : > { %v851_v17 = vpop.eup %850  ;;  %599 = vadd.xlane.f32.xlu0 %v598_v15  ;;  %602 = vadd.xlane.f32.xlu1 %v601_v16  ;;  %v592_v18 = vsel %vm330_vm0, %v849_v14, 0.0 }
 0x1b3   : > { %v607_v19 = vsel %vm330_vm0, %v851_v17, 0.0 }
 0x1b4   : > { %v853_v20 = vpop.eup %852 }
 0x1b5   : > { %v604_v21 = vsel %vm330_vm0, %v853_v20, 0.0 }
 0x1b6   : > { %593 = vadd.xlane.f32.xlu0 %v592_v18  ;;  %608 = vadd.xlane.f32.xlu1 %v607_v19 }
 0x1b8   : > { %v855_v22 = vpop.eup %854 }
 0x1b9   : > { %v610_v23 = vsel %vm330_vm0, %v855_v22, 0.0 }
 0x1ba   : > { %605 = vadd.xlane.f32.xlu0 %v604_v21 }
 0x1be   : > { %611 = vadd.xlane.f32.xlu0 %v610_v23 }
 0x237   : > { %v597_v24 = vpop.xlane.xlu1 %596 }
 0x238   : > { %856 = vrcp.f32 %v597_v24 }
 0x23b   : > { %v591_v25 = vpop.xlane.xlu1 %590 }
 0x23c   : > { %858 = vrcp.f32 %v591_v25 }
 0x23f   : > { %v600_v26 = vpop.xlane.xlu0 %599  ;;  %v603_v27 = vpop.xlane.xlu1 %602 }
 0x240   : > { %860 = vrcp.f32 %v600_v26 }
 0x241   : > { %862 = vrcp.f32 %v603_v27 }
 0x242   : > { %v857_v28 = vpop.eup %856 }
 0x243   : > { %v618_v29 = vmul.f32 %v857_v28, %v841_v4  ;;  %v594_v30 = vpop.xlane.xlu0 %593  ;;  %v609_v31 = vpop.xlane.xlu1 %608 }
 0x244   : > { %864 = vrcp.f32 %v594_v30 }
 0x245   : > { %631 = vst.msk [vmem:[%s1077_s28 + $0x10] sm:$0xff] %vm330_vm0, %v618_v29  ;;  %866 = vrcp.f32 %v609_v31 }
 0x246   : > { %v859_v32 = vpop.eup %858 }
 0x247   : > { %v614_v33 = vmul.f32 %v859_v32, %v843_v9  ;;  %v606_v34 = vpop.xlane.xlu0 %605 }
 0x248   : > { %868 = vrcp.f32 %v606_v34 }
 0x249   : > { %629 = vst.msk [vmem:[%s1077_s28] sm:$0xff] %vm330_vm0, %v614_v33 }
 0x24a   : > { %v861_v35 = vpop.eup %860 }
 0x24b   : > { %v863_v36 = vpop.eup %862  ;;  %v620_v37 = vmul.f32 %v861_v35, %v847_v13  ;;  %v612_v38 = vpop.xlane.xlu0 %611 }
 0x24c   : > { %v622_v39 = vmul.f32 %v863_v36, %v845_v12  ;;  %870 = vrcp.f32 %v612_v38 }
 0x24d   : > { %632 = vst.msk [vmem:[%s1077_s28 + $0x18] sm:$0xff] %vm330_vm0, %v620_v37 }
 0x24e   : > { %v865_v40 = vpop.eup %864  ;;  %633 = vst.msk [vmem:[%s1077_s28 + $0x20] sm:$0xff] %vm330_vm0, %v622_v39 }
 0x24f   : > { %v867_v41 = vpop.eup %866  ;;  %v616_v42 = vmul.f32 %v865_v40, %v849_v14 }
 0x250   : > { %v626_v43 = vmul.f32 %v867_v41, %v851_v17 }
 0x251   : > { %630 = vst.msk [vmem:[%s1077_s28 + $0x8] sm:$0xff] %vm330_vm0, %v616_v42 }
 0x252   : > { %v869_v44 = vpop.eup %868  ;;  %635 = vst.msk [vmem:[%s1077_s28 + $0x30] sm:$0xff] %vm330_vm0, %v626_v43 }
 0x253   : > { %v624_v45 = vmul.f32 %v869_v44, %v853_v20 }
 0x255   : > { %634 = vst.msk [vmem:[%s1077_s28 + $0x28] sm:$0xff] %vm330_vm0, %v624_v45 }
 0x256   : > { %v871_v46 = vpop.eup %870 }
 0x257   : > { %v628_v47 = vmul.f32 %v871_v46, %v855_v22 }
 0x259   : > { %636 = vst.msk [vmem:[%s1077_s28 + $0x38] sm:$0xff] %vm330_vm0, %v628_v47 }
 0x25a PF: > { %s15_s20 = sadd.s32 1, %s894_s20   ;;  %s1110_s18 = smov %s890_s19 }
 0x25b   : > { %p12_p6 = scmp.ge.s32.totalorder %s15_s20, 4   ;;  %s1111_s19 = smov %s1113_s21 }
 0x25d   :  { %14 = sbr.rel (!%p12_p6) target bundleno = 2 (0x2), region = 87 }

// kernel: gcn_forward.3
= control target key start
LH: loop header
LB: loop body
LE: loop exit
PB: predicated region body
PF: predicated region fallthrough
CT: control target
= control target key end

     0   :  { %s987_s18 = smov 0   ;;  %s989_s19 = smov 0   ;;  %s1117_s0 = inlined_call_operand.vmem [shape: f32[128,128], index: 0, kind: input, shape index: {}]   ;;  %s1118_s1 = inlined_call_operand.vmem [shape: f32[128,16], index: 1, kind: input, shape index: {}]   ;;  %s1119_s2 = inlined_call_operand.vmem [shape: f32[16,64], index: 2, kind: input, shape index: {}]   ;;  %s1120_s3 = inlined_call_operand.vmem [shape: s8[128,128], index: 3, kind: output, shape index: {0}]   ;;  %s1121_s4 = inlined_call_operand.vmem [shape: f32[128,1], index: 4, kind: output, shape index: {1}]   ;;  %s1122_s5 = inlined_call_operand.vmem [shape: bf16[128,64], index: 5, kind: output, shape index: {2}]  }
   0x1   :  { %s991_s20 = smov 0  }
   0x2 LB: > { %s28_s21 = sadd.s32 1, %s949_s19  ;;  %p818_p0 = scmp.ge.s32.totalorder %s953_s20, 1  ;;  %s953_s20 = sphi %s991_s20, %s16_s20   ;;  %s949_s19 = sphi %s989_s19, %s1125_s19   ;;  %s945_s18 = sphi %s987_s18, %s1124_s18  }
   0x3   : > { %p30_p1 = scmp.ge.s32.totalorder %s28_s21, 2  ;;  %p223_p2 = scmp.lt.s32.totalorder %s953_s20, 3 }
   0x5   : > { %s1127_s21 = smov (%p30_p1, %s28_s21), 0  ;;  %p224_p3 = pnand %p818_p0, %p223_p2 }
   0x6   : > { %s819_s22 = sshll.u32 (!%p224_p3), %s945_s18, 3  ;;  %s823_s23 = sshll.u32 (!%p224_p3), %s945_s18, 1  ;;  %v435_v0 = vld [vmem:[%s1119_s2] sm:$0xff] (!%p224_p3)  ;;  %v436_v1 = vld [vmem:[%s1119_s2 + $0x8] sm:$0xff] (!%p224_p3)  ;;  %vm350_vm0 = vcmask (!%p224_p3), 7168   ;;  %v955_v3 = vmov (!%p224_p3), 1.0  }
   0x7   : > { %227 = sbr.rel (%p224_p3) target bundleno = 342 (0x156), region = 32  ;;  %p273_p4 = scmp.lt.s32.totalorder (!%p224_p3), %s819_s22, 15  ;;  %v881_v2 = vpack.c.bf16 (!%p224_p3), %v436_v1, %v435_v0  ;;  %351 = vst.msk [vmem:[#allocation2] sm:$0xff] (!%p224_p3), %vm350_vm0, %v955_v3  ;;  %352 = vst.msk [vmem:[#allocation2 + $0x8] sm:$0xff] (!%p224_p3), %vm350_vm0, %v955_v3  ;;  %vm437_vm1 = vcmask (!%p224_p3), 130048   ;;  %v956_v34 = vmov (!%p224_p3), 0  }
   0x8   : > { %p1015_p5 = scmp.lt.s32.totalorder (!%p224_p3), %s823_s23, 3  ;;  %353 = vst.msk [vmem:[#allocation2 + $0x10] sm:$0xff] (!%p224_p3), %vm350_vm0, %v955_v3  ;;  %354 = vst.msk [vmem:[#allocation2 + $0x18] sm:$0xff] (!%p224_p3), %vm350_vm0, %v955_v3  ;;  %913 = vset.pattern.permute.xlu0 (!%p224_p3), %v956_v34  ;;  %914 = vset.pattern.permute.xlu1 (!%p224_p3), %v956_v34  ;;  %vm647_vm2 = vcmask (!%p224_p3), 519168  }
   0x9   : > { %355 = vst.msk [vmem:[#allocation2 + $0x20] sm:$0xff] (!%p224_p3), %vm350_vm0, %v955_v3  ;;  %356 = vst.msk [vmem:[#allocation2 + $0x28] sm:$0xff] (!%p224_p3), %vm350_vm0, %v955_v3  ;;  %882 = vmatprep.subr.bf16.mxu0 (!%p224_p3), %v881_v2  ;;  %885 = vmatprep.subr.bf16.mxu1 (!%p224_p3), %v881_v2 }
   0xa   : > { %357 = vst.msk [vmem:[#allocation2 + $0x30] sm:$0xff] (!%p224_p3), %vm350_vm0, %v955_v3  ;;  %358 = vst.msk [vmem:[#allocation2 + $0x38] sm:$0xff] (!%p224_p3), %vm350_vm0, %v955_v3  ;;  %884 = vmatpush3.bf16.msra.mxu0 (!%p224_p3), %v881_v2  ;;  %886 = vmatpush3.bf16.msra.mxu1 (!%p224_p3), %v881_v2 }
   0xe   : > { %s1129_s22 = smov (!%p273_p4, %s819_s22), 15  ;;  %s1131_s23 = smov (!%p1015_p5, %s823_s23), 3  ;;  %v359_v35 = vld [vmem:[#allocation2] sm:$0xff]  ;;  %v360_v41 = vld [vmem:[#allocation2 + $0x8] sm:$0xff] }
   0xf   : > { %s1034_s29 = sshll.u32 %s1129_s22, 3  ;;  %s824_s11 = sshll.u32 %s1131_s23, 3  ;;  %v361_v36 = vld [vmem:[#allocation2 + $0x10] sm:$0xff]  ;;  %v362_v42 = vld [vmem:[#allocation2 + $0x18] sm:$0xff] }
  0x10   : > { %s279_s7 = scalar_lea.vmem %s1117_s0, %s1034_s29  ;;  %s1044_s10 = scalar_lea.vmem %s1118_s1, %s1034_s29  ;;  %v363_v47 = vld [vmem:[#allocation2 + $0x20] sm:$0xff]  ;;  %v364_v48 = vld [vmem:[#allocation2 + $0x28] sm:$0xff] }
  0x11   : > { %v308_v4 = vld [vmem:[%s279_s7] sm:$0xff]  ;;  %v309_v5 = vld [vmem:[%s279_s7 + $0x8] sm:$0xff]  ;;  %v310_v6 = vld [vmem:[%s279_s7 + $0x10] sm:$0xff]  ;;  %s294_s14 = scalar_lea.vmem %s1120_s3, %s824_s11  ;;  %s300_s17 = scalar_lea.vmem %s1121_s4, %s1034_s29 }
  0x12   : > { %367 = vadd.xlane.f32.xlu0 %v308_v4  ;;  %v316_v7 = vtrunc.f32 %v308_v4  ;;  %v317_v8 = vtrunc.f32 %v309_v5  ;;  %371 = vadd.xlane.f32.xlu1 %v310_v6  ;;  %v318_v9 = vtrunc.f32 %v310_v6  ;;  %v311_v10 = vld [vmem:[%s279_s7 + $0x18] sm:$0xff]  ;;  %v312_v11 = vld [vmem:[%s279_s7 + $0x20] sm:$0xff]  ;;  %v313_v12 = vld [vmem:[%s279_s7 + $0x28] sm:$0xff]  ;;  %s828_s18 = sshll.u32 %s1129_s22, 2 }
  0x13   : > { %v319_v13 = vtrunc.f32 %v311_v10  ;;  %v320_v14 = vtrunc.f32 %v312_v11  ;;  %v321_v15 = vtrunc.f32 %v313_v12  ;;  %v314_v16 = vld [vmem:[%s279_s7 + $0x30] sm:$0xff]  ;;  %v315_v17 = vld [vmem:[%s279_s7 + $0x38] sm:$0xff]  ;;  %v427_v18 = vld [vmem:[%s1044_s10] sm:$0xff]  ;;  %s1090_s25 = scalar_lea.vmem %s1122_s5, %s828_s18 }
  0x14   : > { %v324_v19 = vpack.c.f32.eXmY %v316_v7, %v317_v8, 312  ;;  %v322_v20 = vtrunc.f32 %v314_v16  ;;  %v323_v21 = vtrunc.f32 %v315_v17  ;;  %869 = vmatprep.mubr.msk.f32.mxu0 %vm437_vm1, %v427_v18  ;;  %v428_v22 = vld [vmem:[%s1044_s10 + $0x8] sm:$0xff]  ;;  %v429_v23 = vld [vmem:[%s1044_s10 + $0x10] sm:$0xff]  ;;  %v431_v26 = vld [vmem:[%s1044_s10 + $0x20] sm:$0xff] }
  0x15   : > { %v328_v24 = vpack.c.f32.eXmY %v318_v9, %v319_v13, 312  ;;  %v334_v25 = vpack.c.f32.eXmY %v320_v14, %v321_v15, 312  ;;  %870 = vmatmul.mubr.msk.f32.vlgmr.msra.gmra.mrb[0].mxu0 %vm437_vm1, %v428_v22  ;;  %v432_v27 = vld [vmem:[%s1044_s10 + $0x28] sm:$0xff]  ;;  %v430_v29 = vld [vmem:[%s1044_s10 + $0x18] sm:$0xff]  ;;  %v433_v30 = vld [vmem:[%s1044_s10 + $0x30] sm:$0xff]  ;;  %875 = vmatprep.mubr.msk.f32.mxu1 %vm437_vm1, %v431_v26 }
  0x16   : > { %369 = vadd.xlane.f32.xlu0 %v309_v5  ;;  %373 = vadd.xlane.f32.xlu1 %v311_v10  ;;  %v338_v28 = vpack.c.f32.eXmY %v322_v20, %v323_v21, 312  ;;  %v434_v33 = vld [vmem:[%s1044_s10 + $0x38] sm:$0xff]  ;;  %v365_v53 = vld [vmem:[#allocation2 + $0x30] sm:$0xff] }
  0x17   : > { %v332_v31 = vpack.c.b8 %v328_v24, %v324_v19  ;;  %872 = vmatprep.mubr.msk.f32.mxu0 %vm437_vm1, %v429_v23  ;;  %876 = vmatmul.mubr.msk.f32.vlgmr.msra.gmra.mrb[0].mxu1 %vm437_vm1, %v432_v27  ;;  %v366_v55 = vld [vmem:[#allocation2 + $0x38] sm:$0xff] }
  0x18   : > { %v342_v32 = vpack.c.b8 %v338_v28, %v334_v25  ;;  %878 = vmatprep.mubr.msk.f32.mxu1 %vm437_vm1, %v433_v30 }
  0x19   : > { %344 = vst [vmem:[%s294_s14] sm:$0xff] %v332_v31  ;;  %873 = vmatmul.mubr.msk.f32.gmra.mrb[2].mxu0 %vm437_vm1, %v430_v29 }
  0x1a   : > { %375 = vadd.xlane.f32.xlu0 %v312_v11  ;;  %377 = vadd.xlane.f32.xlu1 %v313_v12  ;;  %345 = vst [vmem:[%s294_s14 + $0x8] sm:$0xff] %v342_v32 }
  0x1b   : > { %879 = vmatmul.mubr.msk.f32.gmra.mrb[2].mxu1 %vm437_vm1, %v434_v33 }
  0x1e   : > { %379 = vadd.xlane.f32.xlu0 %v314_v16  ;;  %381 = vadd.xlane.f32.xlu1 %v315_v17 }
  0x9f   : > { %v368_v37 = vpop.xlane.xlu0 %367  ;;  %v372_v38 = vpop.xlane.xlu1 %371 }
  0xa0   : > { %v383_v39 = vadd.f32 %v368_v37, %v359_v35  ;;  %v385_v40 = vadd.f32 %v372_v38, %v361_v36 }
  0xa2   : > { %392 = vst.msk [vmem:[#allocation2] sm:$0xff] %vm350_vm0, %v383_v39  ;;  %394 = vst.msk [vmem:[#allocation2 + $0x10] sm:$0xff] %vm350_vm0, %v385_v40 }
  0xa3   : > { %v370_v43 = vpop.xlane.xlu0 %369  ;;  %v374_v44 = vpop.xlane.xlu1 %373 }
  0xa4   : > { %v384_v45 = vadd.f32 %v370_v43, %v360_v41  ;;  %v386_v46 = vadd.f32 %v374_v44, %v362_v42 }
  0xa6   : > { %393 = vst.msk [vmem:[#allocation2 + $0x8] sm:$0xff] %vm350_vm0, %v384_v45  ;;  %395 = vst.msk [vmem:[#allocation2 + $0x18] sm:$0xff] %vm350_vm0, %v386_v46 }
  0xa7   : > { %v376_v49 = vpop.xlane.xlu0 %375  ;;  %v378_v50 = vpop.xlane.xlu1 %377 }
  0xa8   : > { %v387_v51 = vadd.f32 %v376_v49, %v363_v47  ;;  %v388_v52 = vadd.f32 %v378_v50, %v364_v48 }
  0xa9   : > { %v403_v54 = vld [vmem:[#allocation2] sm:$0xff]  ;;  %v405_v56 = vld [vmem:[#allocation2 + $0x10] sm:$0xff] }
  0xaa   : > { %396 = vst.msk [vmem:[#allocation2 + $0x20] sm:$0xff] %vm350_vm0, %v387_v51  ;;  %397 = vst.msk [vmem:[#allocation2 + $0x28] sm:$0xff] %vm350_vm0, %v388_v52  ;;  %915 = vrsqrt.f32 %v403_v54 }
  0xab   : > { %v380_v57 = vpop.xlane.xlu0 %379  ;;  %v382_v58 = vpop.xlane.xlu1 %381  ;;  %917 = vrsqrt.f32 %v405_v56 }
  0xac   : > { %v389_v59 = vadd.f32 %v380_v57, %v365_v53  ;;  %v390_v60 = vadd.f32 %v382_v58, %v366_v55 }
  0xad   : > { %v404_v61 = vld [vmem:[#allocation2 + $0x8] sm:$0xff]  ;;  %v406_v62 = vld [vmem:[#allocation2 + $0x18] sm:$0xff] }
  0xae   : > { %398 = vst.msk [vmem:[#allocation2 + $0x30] sm:$0xff] %vm350_vm0, %v389_v59  ;;  %919 = vrsqrt.f32 %v404_v61  ;;  %399 = vst.msk [vmem:[#allocation2 + $0x38] sm:$0xff] %vm350_vm0, %v390_v60 }
  0xaf   : > { %921 = vrsqrt.f32 %v406_v62 }
  0xb1   : > { %v407_v63 = vld [vmem:[#allocation2 + $0x20] sm:$0xff]  ;;  %v408_v0 = vld [vmem:[#allocation2 + $0x28] sm:$0xff] }
  0xb2   : > { %923 = vrsqrt.f32 %v407_v63 }
  0xb3   : > { %925 = vrsqrt.f32 %v408_v0 }
  0xb4   : > { %v916_v1 = vpop.eup %915 }
  0xb5   : > { %v918_v2 = vpop.eup %917  ;;  %569 = vperm.xlu0 %913, %v916_v1   ;;  %419 = vst.msk [vmem:[%s300_s17] sm:$0xff] %vm350_vm0, %v916_v1  ;;  %v409_v3 = vld [vmem:[#allocation2 + $0x30] sm:$0xff]  ;;  %v410_v4 = vld [vmem:[#allocation2 + $0x38] sm:$0xff] }
  0xb6   : > { %421 = vst.msk [vmem:[%s300_s17 + $0x10] sm:$0xff] %vm350_vm0, %v918_v2  ;;  %927 = vrsqrt.f32 %v409_v3 }
  0xb7   : > { %929 = vrsqrt.f32 %v410_v4 }
  0xb8   : > { %v920_v5 = vpop.eup %919 }
  0xb9   : > { %v922_v6 = vpop.eup %921  ;;  %574 = vperm.xlu1 %914, %v920_v5   ;;  %420 = vst.msk [vmem:[%s300_s17 + $0x8] sm:$0xff] %vm350_vm0, %v920_v5 }
  0xba   : > { %422 = vst.msk [vmem:[%s300_s17 + $0x18] sm:$0xff] %vm350_vm0, %v922_v6 }
  0xbc   : > { %v924_v7 = vpop.eup %923 }
  0xbd   : > { %v926_v8 = vpop.eup %925  ;;  %579 = vperm.xlu1 %914, %v918_v2   ;;  %423 = vst.msk [vmem:[%s300_s17 + $0x20] sm:$0xff] %vm350_vm0, %v924_v7 }
  0xbe   : > { %424 = vst.msk [vmem:[%s300_s17 + $0x28] sm:$0xff] %vm350_vm0, %v926_v8 }
  0xc0   : > { %v928_v9 = vpop.eup %927 }
  0xc1   : > { %v930_v10 = vpop.eup %929  ;;  %584 = vperm.xlu1 %914, %v922_v6   ;;  %425 = vst.msk [vmem:[%s300_s17 + $0x30] sm:$0xff] %vm350_vm0, %v928_v9 }
  0xc2   : > { %426 = vst.msk [vmem:[%s300_s17 + $0x38] sm:$0xff] %vm350_vm0, %v930_v10 }
  0xc5   : > { %589 = vperm.xlu1 %914, %v924_v7  }
  0xc9   : > { %594 = vperm.xlu1 %914, %v926_v8  }
  0xcd   : > { %599 = vperm.xlu1 %914, %v928_v9  }
  0xd1   : > { %604 = vperm.xlu1 %914, %v930_v10  }
  0xe8   : > { %v871_v11 = vpop.f32.mrb[0].mxu0 }
  0xe9   : > { %v528_v12 = vpop.f32.mrb[1].mxu0 }
  0xea   : > { %v877_v13 = vpop.f32.mrb[0].mxu1 }
  0xeb   : > { %v548_v15 = vpop.f32.mrb[1].mxu1 }
  0xec   : > { %v874_v14 = vpop.f32.mrb[2].mxu0 }
  0xed   : > { %v538_v16 = vpop.f32.mrb[3].mxu0 }
  0xee   : > { %v880_v17 = vpop.f32.mrb[2].mxu1 }
  0xef   : > { %v558_v18 = vpop.f32.mrb[3].mxu1 }
 0x134   : > { %v570_v19 = vpop.permute.xlu0 %569 }
 0x135   : > { %v607_v20 = vmul.f32 %v570_v19, %v528_v12 }
 0x137   : > { %v847_v21 = vpack.c.bf16 %v607_v20, %v607_v20 }
 0x138   : > { %v575_v22 = vpop.permute.xlu1 %574 }
 0x139   : > { %648 = vst.msk [vmem:[%s1090_s25] sm:$0xf] %vm647_vm2, %v847_v21  ;;  %v608_v23 = vmul.f32 %v871_v11, %v575_v22 }
 0x13b   : > { %v848_v24 = vpack.c.bf16 %v608_v23, %v608_v23 }
 0x13c   : > { %v580_v25 = vpop.permute.xlu1 %579 }
 0x13d   : > { %649 = vst.msk [vmem:[%s1090_s25 + $0x4] sm:$0xf] %vm647_vm2, %v848_v24  ;;  %v609_v26 = vmul.f32 %v580_v25, %v538_v16 }
 0x13f   : > { %v849_v27 = vpack.c.bf16 %v609_v26, %v609_v26 }
 0x140   : > { %v585_v28 = vpop.permute.xlu1 %584 }
 0x141   : > { %650 = vst.msk [vmem:[%s1090_s25 + $0x8] sm:$0xf] %vm647_vm2, %v849_v27  ;;  %v610_v29 = vmul.f32 %v874_v14, %v585_v28 }
 0x143   : > { %v850_v30 = vpack.c.bf16 %v610_v29, %v610_v29 }
 0x144   : > { %v590_v31 = vpop.permute.xlu1 %589 }
 0x145   : > { %651 = vst.msk [vmem:[%s1090_s25 + $0xc] sm:$0xf] %vm647_vm2, %v850_v30  ;;  %v611_v32 = vmul.f32 %v590_v31, %v548_v15 }
 0x147   : > { %v851_v33 = vpack.c.bf16 %v611_v32, %v611_v32 }
 0x148   : > { %v595_v34 = vpop.permute.xlu1 %594 }
 0x149   : > { %652 = vst.msk [vmem:[%s1090_s25 + $0x10] sm:$0xf] %vm647_vm2, %v851_v33  ;;  %v612_v35 = vmul.f32 %v877_v13, %v595_v34 }
 0x14b   : > { %v852_v36 = vpack.c.bf16 %v612_v35, %v612_v35 }
 0x14c   : > { %v600_v37 = vpop.permute.xlu1 %599 }
 0x14d   : > { %653 = vst.msk [vmem:[%s1090_s25 + $0x14] sm:$0xf] %vm647_vm2, %v852_v36  ;;  %v613_v38 = vmul.f32 %v600_v37, %v558_v18 }
 0x14f   : > { %v853_v39 = vpack.c.bf16 %v613_v38, %v613_v38 }
 0x150   : > { %v605_v40 = vpop.permute.xlu1 %604 }
 0x151   : > { %654 = vst.msk [vmem:[%s1090_s25 + $0x18] sm:$0xf] %vm647_vm2, %v853_v39  ;;  %v614_v41 = vmul.f32 %v880_v17, %v605_v40 }
 0x153   : > { %v854_v42 = vpack.c.bf16 %v614_v41, %v614_v41 }
 0x155   : > { %655 = vst.msk [vmem:[%s1090_s25 + $0x1c] sm:$0xf] %vm647_vm2, %v854_v42 }
 0x156 PF: > { %s16_s20 = sadd.s32 1, %s953_s20   ;;  %s1124_s18 = smov %s949_s19 }
 0x157   : > { %p13_p6 = scmp.ge.s32.totalorder %s16_s20, 4   ;;  %s1125_s19 = smov %s1127_s21 }
 0x159   :  { %15 = sbr.rel (!%p13_p6) target bundleno = 2 (0x2), region = 97 }

// kernel: gcn_forward.4
= control target key start
LH: loop header
LB: loop body
LE: loop exit
PB: predicated region body
PF: predicated region fallthrough
CT: control target
= control target key end

     0   :  { %s1038_s18 = smov 0   ;;  %s1040_s19 = smov 0   ;;  %s1198_s0 = inlined_call_operand.vmem [shape: s8[128,128], index: 0, kind: input, shape index: {}]   ;;  %s1199_s1 = inlined_call_operand.vmem [shape: bf16[128,64], index: 1, kind: input, shape index: {}]   ;;  %s1200_s2 = inlined_call_operand.vmem [shape: f32[128,1], index: 2, kind: input, shape index: {}]   ;;  %s1201_s3 = inlined_call_operand.vmem [shape: f32[1,64], index: 3, kind: input, shape index: {}]   ;;  %s1202_s4 = inlined_call_operand.vmem [shape: f32[64,4], index: 4, kind: input, shape index: {}]   ;;  %s1203_s5 = inlined_call_operand.vmem [shape: f32[128,4], index: 5, kind: output, shape index: {}]  }
   0x1   :  { %s1042_s20 = smov 0  }
   0x2 LB: > { %s27_s21 = sadd.s32 1, %s1001_s19  ;;  %p805_p0 = scmp.ge.s32.totalorder %s1005_s20, 1  ;;  %s1005_s20 = sphi %s1042_s20, %s15_s20   ;;  %s1001_s19 = sphi %s1040_s19, %s1205_s19   ;;  %s997_s18 = sphi %s1038_s18, %s1204_s18  }
   0x3   : > { %p29_p1 = scmp.ge.s32.totalorder %s27_s21, 2  ;;  %p216_p2 = scmp.lt.s32.totalorder %s1005_s20, 3 }
   0x5   : > { %s1207_s21 = smov (%p29_p1, %s27_s21), 0  ;;  %p217_p3 = pnand %p805_p0, %p216_p2 }
   0x6   : > { %v975_v0 = vld [vmem:[%s1199_s1] sm:$0xff] (!%p217_p3)   ;;  %s806_s24 = sshll.u32 (!%p217_p3), %s997_s18, 1  ;;  %v976_v1 = vld [vmem:[%s1199_s1 + $0x8] sm:$0xff] (!%p217_p3)   ;;  %v1007_v2 = vmov (!%p217_p3), 0   ;;  %v977_v3 = vld [vmem:[%s1199_s1 + $0x10] sm:$0xff] (!%p217_p3)   ;;  %s808_s29 = sshll.u32 (!%p217_p3), %s997_s18, 3 }
   0x7   : > { %220 = sbr.rel (%p217_p3) target bundleno = 498 (0x1f2), region = 40  ;;  %p253_p4 = scmp.lt.s32.totalorder (!%p217_p3), %s806_s24, 3  ;;  %880 = vmatprep.subr.bf16.mxu0 (!%p217_p3), %v975_v0  ;;  %973 = vset.pattern.permute.xlu0 (!%p217_p3), %v1007_v2  ;;  %v978_v4 = vld [vmem:[%s1199_s1 + $0x18] sm:$0xff] (!%p217_p3)   ;;  %v979_v7 = vld [vmem:[%s1199_s1 + $0x20] sm:$0xff] (!%p217_p3)   ;;  %v980_v12 = vld [vmem:[%s1199_s1 + $0x28] sm:$0xff] (!%p217_p3)   ;;  %vm299_vm0 = vcmask (!%p217_p3), 523264  }
   0x8   : > { %881 = vmatpush3.bf16.msra.mxu0 (!%p217_p3), %v975_v0  ;;  %974 = vset.pattern.permute.xlu1 (!%p217_p3), %v1007_v2  ;;  %p262_p5 = scmp.lt.s32.totalorder (!%p217_p3), %s808_s29, 15  ;;  %s812_s17 = sshll.u32 (!%p217_p3), %s997_s18, 6  ;;  %v981_v17 = vld [vmem:[%s1199_s1 + $0x30] sm:$0xff] (!%p217_p3)   ;;  %v982_v20 = vld [vmem:[%s1199_s1 + $0x38] sm:$0xff] (!%p217_p3)   ;;  %v563_v33 = vld [vmem:[%s1202_s4] sm:$0xff] (!%p217_p3)  ;;  %vm708_vm1 = vcmask (!%p217_p3), 31744  }
   0x9   : > { %882 = vmatprep.subr.bf16.mxu0 (!%p217_p3), %v976_v1  ;;  %s279_s22 = sshra.s32 (!%p217_p3), %s812_s17, 3  ;;  %v564_v34 = vld [vmem:[%s1202_s4 + $0x8] sm:$0xff] (!%p217_p3)  ;;  %v565_v38 = vld [vmem:[%s1202_s4 + $0x10] sm:$0xff] (!%p217_p3)  ;;  %v566_v39 = vld [vmem:[%s1202_s4 + $0x18] sm:$0xff] (!%p217_p3) }
   0xa   : > { %s813_s23 = sshll.u32 (!%p217_p3), %s279_s22, 2  ;;  %v932_v36 = vpack.c.bf16 (!%p217_p3), %v564_v34, %v563_v33  ;;  %v936_v40 = vpack.c.bf16 (!%p217_p3), %v566_v39, %v565_v38  ;;  %v567_v41 = vld [vmem:[%s1202_s4 + $0x20] sm:$0xff] (!%p217_p3)  ;;  %v568_v42 = vld [vmem:[%s1202_s4 + $0x28] sm:$0xff] (!%p217_p3)  ;;  %v569_v44 = vld [vmem:[%s1202_s4 + $0x30] sm:$0xff] (!%p217_p3) }
   0xb   : > { %s1093_s26 = scalar_lea.vmem (!%p217_p3), %s1199_s1, %s813_s23  ;;  %v940_v43 = vpack.c.bf16 (!%p217_p3), %v568_v42, %v567_v41  ;;  %v570_v45 = vld [vmem:[%s1202_s4 + $0x38] sm:$0xff] (!%p217_p3) }
   0xc   : > { %883 = vmatpush3.bf16.msra.mxu0 (!%p217_p3), %v976_v1  ;;  %v849_v13 = vld [vmem:[%s1093_s26 + $0x8] sm:$0xff] (!%p217_p3)   ;;  %v834_v25 = vld [vmem:[%s1093_s26] sm:$0xff] (!%p217_p3)   ;;  %v851_v29 = vld [vmem:[%s1093_s26 + $0x18] sm:$0xff] (!%p217_p3)   ;;  %933 = vmatprep.subr.bf16.mxu1 (!%p217_p3), %v932_v36  ;;  %v944_v46 = vpack.c.bf16 (!%p217_p3), %v570_v45, %v569_v44 }
   0xd   : > { %884 = vmatprep.subr.bf16.mxu0 (!%p217_p3), %v977_v3  ;;  %v839_v14 = vunpack.c.l.bf16 (!%p217_p3), %v849_v13  ;;  %v835_v26 = vunpack.c.l.bf16 (!%p217_p3), %v834_v25  ;;  %v840_v27 = vunpack.c.h.bf16 (!%p217_p3), %v849_v13  ;;  %v836_v28 = vunpack.c.h.bf16 (!%p217_p3), %v834_v25  ;;  %v850_v31 = vld [vmem:[%s1093_s26 + $0x10] sm:$0xff] (!%p217_p3)   ;;  %935 = vmatpush3.bf16.msra.mxu1 (!%p217_p3), %v932_v36 }
   0xe   : > { %s1209_s24 = smov (!%p253_p4, %s806_s24), 3  ;;  %s1211_s29 = smov (!%p262_p5, %s808_s29), 15  ;;  %v847_v30 = vunpack.c.l.bf16 %v851_v29  ;;  %v843_v32 = vunpack.c.l.bf16 %v850_v31  ;;  %v848_v35 = vunpack.c.h.bf16 %v851_v29  ;;  %v844_v37 = vunpack.c.h.bf16 %v850_v31  ;;  %937 = vmatprep.subr.bf16.mxu1 %v936_v40 }
   0xf   : > { %s807_s30 = sshll.u32 %s1209_s24, 3  ;;  %s809_s11 = sshll.u32 %s1211_s29, 3  ;;  %302 = vst.msk [vmem:[#allocation2 + $0x10] sm:$0xff] %vm299_vm0, %v839_v14  ;;  %300 = vst.msk [vmem:[#allocation2] sm:$0xff] %vm299_vm0, %v835_v26 }
  0x10   : > { %s1072_s8 = scalar_lea.vmem %s1198_s0, %s807_s30  ;;  %885 = vmatpush3.bf16.msra.mxu0 %v977_v3  ;;  %s265_s14 = scalar_lea.vmem %s1200_s2, %s809_s11  ;;  %303 = vst.msk [vmem:[#allocation2 + $0x18] sm:$0xff] %vm299_vm0, %v840_v27  ;;  %301 = vst.msk [vmem:[#allocation2 + $0x8] sm:$0xff] %vm299_vm0, %v836_v28 }
  0x11   : > { %v337_v5 = vld [vmem:[%s1072_s8] sm:$0xff]  ;;  %886 = vmatprep.subr.bf16.mxu0 %v978_v4  ;;  %v478_v9 = vld [vmem:[%s265_s14 + $0x10] sm:$0xff]  ;;  %v477_v10 = vld [vmem:[%s265_s14 + $0x8] sm:$0xff]  ;;  %306 = vst.msk [vmem:[#allocation2 + $0x30] sm:$0xff] %vm299_vm0, %v847_v30  ;;  %939 = vmatpush3.bf16.msra.mxu1 %v936_v40 }
  0x12   : > { %v339_v6 = vunpack.c.l.s8.bf16 %v337_v5  ;;  %v476_v8 = vld [vmem:[%s265_s14] sm:$0xff]  ;;  %504 = vperm.xlu1 %974, %v478_v9   ;;  %v479_v11 = vld [vmem:[%s265_s14 + $0x18] sm:$0xff]  ;;  %v481_v16 = vld [vmem:[%s265_s14 + $0x28] sm:$0xff]  ;;  %v340_v22 = vunpack.c.h.s8.bf16 %v337_v5  ;;  %304 = vst.msk [vmem:[#allocation2 + $0x20] sm:$0xff] %vm299_vm0, %v843_v32  ;;  %941 = vmatprep.subr.bf16.mxu1 %v940_v43 }
  0x13   : > { %494 = vperm.xlu0 %973, %v476_v8   ;;  %v480_v15 = vld [vmem:[%s265_s14 + $0x20] sm:$0xff]  ;;  %v482_v18 = vld [vmem:[%s265_s14 + $0x30] sm:$0xff]  ;;  %v483_v19 = vld [vmem:[%s265_s14 + $0x38] sm:$0xff]  ;;  %307 = vst.msk [vmem:[#allocation2 + $0x38] sm:$0xff] %vm299_vm0, %v848_v35 }
  0x14   : > { %896 = vmatprep.mubr.bf16.mxu0 %v339_v6  ;;  %887 = vmatpush3.bf16.msra.mxu0 %v978_v4  ;;  %v338_v21 = vld [vmem:[%s1072_s8 + $0x8] sm:$0xff]  ;;  %305 = vst.msk [vmem:[#allocation2 + $0x28] sm:$0xff] %vm299_vm0, %v844_v37  ;;  %v822_v9 = vld [vmem:[%s1201_s3] ss:$0 sm:$0xff]  ;;  %s271_s8 = scalar_lea.vmem %s1203_s5, %s809_s11 }
  0x15   : > { %888 = vmatprep.subr.bf16.mxu0 %v979_v7  ;;  %v341_v23 = vunpack.c.l.s8.bf16 %v338_v21  ;;  %v342_v24 = vunpack.c.h.s8.bf16 %v338_v21  ;;  %943 = vmatpush3.bf16.msra.mxu1 %v940_v43 }
  0x16   : > { %509 = vperm.xlu1 %974, %v479_v11   ;;  %945 = vmatprep.subr.bf16.mxu1 %v944_v46  ;;  %v331_v47 = vld [vmem:[#allocation2 + $0x10] sm:$0xff]  ;;  %v329_v48 = vld [vmem:[#allocation2] sm:$0xff] }
  0x17   : > { %499 = vperm.xlu0 %973, %v477_v10   ;;  %v332_v51 = vld [vmem:[#allocation2 + $0x18] sm:$0xff]  ;;  %v330_v54 = vld [vmem:[#allocation2 + $0x8] sm:$0xff] }
  0x18   : > { %889 = vmatpush3.bf16.msra.mxu0 %v979_v7  ;;  %v335_v62 = vld [vmem:[#allocation2 + $0x30] sm:$0xff] }
  0x19   : > { %890 = vmatprep.subr.bf16.mxu0 %v980_v12  ;;  %947 = vmatpush3.bf16.msra.mxu1 %v944_v46  ;;  %v333_v63 = vld [vmem:[#allocation2 + $0x20] sm:$0xff] }
  0x1a   : > { %519 = vperm.xlu1 %974, %v481_v16   ;;  %v336_v1 = vld [vmem:[#allocation2 + $0x38] sm:$0xff] }
  0x1b   : > { %514 = vperm.xlu0 %973, %v480_v15   ;;  %v334_v5 = vld [vmem:[#allocation2 + $0x28] sm:$0xff] }
  0x1c   : > { %891 = vmatpush3.bf16.msra.mxu0 %v980_v12 }
  0x1d   : > { %892 = vmatprep.subr.bf16.mxu0 %v981_v17 }
  0x1e   : > { %529 = vperm.xlu1 %974, %v483_v19  }
  0x1f   : > { %524 = vperm.xlu0 %973, %v482_v18  }
  0x20   : > { %893 = vmatpush3.bf16.msra.mxu0 %v981_v17 }
  0x21   : > { %894 = vmatprep.subr.bf16.mxu0 %v982_v20 }
  0x24   : > { %895 = vmatpush3.bf16.msra.mxu0 %v982_v20 }
  0x27   : > { %897 = vmatmul.mubr.bf16.vlgmr.msra.gmra.mrb[0].mxu0 %v340_v22 }
  0x28   : > { %900 = vmatprep.mubr.bf16.mxu0 %v341_v23 }
  0x2f   : > { %901 = vmatmul.mubr.bf16.gmra.mrb[4].mxu0 %v342_v24 }
  0x91   : > { %v1144_v57 = vpop.permute.xlu1 %504 }
  0x92   : > { %v1141_v49 = vpop.permute.xlu0 %494 }
  0x95   : > { %v1151_v2 = vpop.permute.xlu1 %509 }
  0x96   : > { %v1148_v61 = vpop.permute.xlu0 %499 }
  0x99   : > { %v520_v23 = vpop.permute.xlu1 %519 }
  0x9a   : > { %v515_v15 = vpop.permute.xlu0 %514 }
  0x9d   : > { %v530_v35 = vpop.permute.xlu1 %529 }
  0x9e   : > { %v525_v27 = vpop.permute.xlu0 %524 }
  0xfa   : > { %v898_v50 = vpop.f32.mrb[0].mxu0 }
  0xfb   : > { %v458_v52 = vadd.f32 %v898_v50, %v331_v47  ;;  %v425_v53 = vpop.f32.mrb[1].mxu0 }
  0xfc   : > { %v456_v55 = vadd.f32 %v425_v53, %v329_v48  ;;  %v899_v56 = vpop.f32.mrb[2].mxu0 }
  0xfd   : > { %467 = vst.msk [vmem:[#allocation2 + $0x10] sm:$0xff] %vm299_vm0, %v458_v52  ;;  %v459_v58 = vadd.f32 %v899_v56, %v332_v51  ;;  %v428_v59 = vpop.f32.mrb[3].mxu0 }
  0xfe   : > { %465 = vst.msk [vmem:[#allocation2] sm:$0xff] %vm299_vm0, %v456_v55  ;;  %v457_v60 = vadd.f32 %v428_v59, %v330_v54 }
  0xff   : > { %468 = vst.msk [vmem:[#allocation2 + $0x18] sm:$0xff] %vm299_vm0, %v459_v58 }
 0x100   : > { %466 = vst.msk [vmem:[#allocation2 + $0x8] sm:$0xff] %vm299_vm0, %v457_v60 }
 0x102   : > { %v902_v0 = vpop.f32.mrb[4].mxu0 }
 0x103   : > { %v462_v3 = vadd.f32 %v902_v0, %v335_v62  ;;  %v441_v4 = vpop.f32.mrb[5].mxu0 }
 0x104   : > { %v486_v6 = vld [vmem:[#allocation2 + $0x10] sm:$0xff]  ;;  %v460_v7 = vadd.f32 %v441_v4, %v333_v63  ;;  %v903_v8 = vpop.f32.mrb[6].mxu0 }
 0x105   : > { %v534_v10 = vmul.f32 %v1144_v57, %v486_v6  ;;  %471 = vst.msk [vmem:[#allocation2 + $0x30] sm:$0xff] %vm299_vm0, %v462_v3  ;;  %v463_v11 = vadd.f32 %v903_v8, %v336_v1  ;;  %v444_v12 = vpop.f32.mrb[7].mxu0  ;;  %v484_v13 = vld [vmem:[#allocation2] sm:$0xff] }
 0x106   : > { %v487_v14 = vld [vmem:[#allocation2 + $0x18] sm:$0xff]  ;;  %469 = vst.msk [vmem:[#allocation2 + $0x20] sm:$0xff] %vm299_vm0, %v460_v7  ;;  %v461_v16 = vadd.f32 %v444_v12, %v334_v5  ;;  %v532_v17 = vmul.f32 %v1141_v49, %v484_v13 }
 0x107   : > { %472 = vst.msk [vmem:[#allocation2 + $0x38] sm:$0xff] %vm299_vm0, %v463_v11  ;;  %v485_v18 = vld [vmem:[#allocation2 + $0x8] sm:$0xff]  ;;  %v535_v19 = vmul.f32 %v1151_v2, %v487_v14  ;;  %v549_v22 = vadd.f32 %v822_v9, %v534_v10 }
 0x108   : > { %470 = vst.msk [vmem:[#allocation2 + $0x28] sm:$0xff] %vm299_vm0, %v461_v16  ;;  %v547_v20 = vadd.f32 %v822_v9, %v532_v17  ;;  %v533_v21 = vmul.f32 %v1148_v61, %v485_v18 }
 0x109   : > { %v550_v26 = vadd.f32 %v822_v9, %v535_v19  ;;  %v557_v30 = vmax.f32 %v549_v22, 0.0 }
 0x10a   : > { %v555_v24 = vmax.f32 %v547_v20, 0.0  ;;  %v548_v25 = vadd.f32 %v822_v9, %v533_v21 }
 0x10b   : > { %v558_v37 = vmax.f32 %v550_v26, 0.0 }
 0x10c   : > { %v490_v28 = vld [vmem:[#allocation2 + $0x30] sm:$0xff]  ;;  %920 = vmatprep.mubr.msk.f32.mxu1 %vm299_vm0, %v555_v24  ;;  %v556_v29 = vmax.f32 %v548_v25, 0.0 }
 0x10d   : > { %v538_v31 = vmul.f32 %v525_v27, %v490_v28  ;;  %v488_v32 = vld [vmem:[#allocation2 + $0x20] sm:$0xff] }
 0x10e   : > { %v491_v33 = vld [vmem:[#allocation2 + $0x38] sm:$0xff]  ;;  %921 = vmatmul.mubr.msk.f32.vlgmr.msra.gmra.mrb[0].mxu1 %vm299_vm0, %v556_v29  ;;  %v536_v34 = vmul.f32 %v515_v15, %v488_v32 }
 0x10f   : > { %923 = vmatprep.mubr.msk.f32.mxu1 %vm299_vm0, %v557_v30  ;;  %v489_v36 = vld [vmem:[#allocation2 + $0x28] sm:$0xff]  ;;  %v539_v38 = vmul.f32 %v530_v35, %v491_v33  ;;  %v553_v41 = vadd.f32 %v822_v9, %v538_v31 }
 0x110   : > { %v551_v39 = vadd.f32 %v822_v9, %v536_v34  ;;  %v537_v40 = vmul.f32 %v520_v23, %v489_v36 }
 0x111   : > { %v554_v44 = vadd.f32 %v822_v9, %v539_v38  ;;  %v561_v46 = vmax.f32 %v553_v41, 0.0 }
 0x112   : > { %924 = vmatmul.mubr.msk.f32.gmra.mrb[2].mxu1 %vm299_vm0, %v558_v37  ;;  %v559_v42 = vmax.f32 %v551_v39, 0.0  ;;  %v552_v43 = vadd.f32 %v822_v9, %v537_v40 }
 0x113   : > { %v562_v47 = vmax.f32 %v554_v44, 0.0 }
 0x114   : > { %926 = vmatprep.mubr.msk.f32.mxu1 %vm299_vm0, %v559_v42  ;;  %v560_v45 = vmax.f32 %v552_v43, 0.0 }
 0x116   : > { %927 = vmatmul.mubr.msk.f32.gmra.mrb[4].mxu1 %vm299_vm0, %v560_v45 }
 0x117   : > { %929 = vmatprep.mubr.msk.f32.mxu1 %vm299_vm0, %v561_v46 }
 0x11a   : > { %930 = vmatmul.mubr.msk.f32.gmra.mrb[6].mxu1 %vm299_vm0, %v562_v47 }
 0x1e1   : > { %v922_v48 = vpop.f32.mrb[0].mxu1 }
 0x1e2   : > { %v701_v50 = vmul.f32 %v922_v48, %v1148_v61  ;;  %v661_v51 = vpop.f32.mrb[1].mxu1 }
 0x1e3   : > { %v700_v52 = vmul.f32 %v661_v51, %v1141_v49 }
 0x1e4   : > { %710 = vst.msk [vmem:[%s271_s8 + $0x8] sm:$0xff] %vm708_vm1, %v701_v50 }
 0x1e5   : > { %709 = vst.msk [vmem:[%s271_s8] sm:$0xff] %vm708_vm1, %v700_v52  ;;  %v925_v53 = vpop.f32.mrb[2].mxu1 }
 0x1e6   : > { %v703_v54 = vmul.f32 %v925_v53, %v1151_v2  ;;  %v671_v55 = vpop.f32.mrb[3].mxu1 }
 0x1e7   : > { %v702_v56 = vmul.f32 %v671_v55, %v1144_v57 }
 0x1e8   : > { %712 = vst.msk [vmem:[%s271_s8 + $0x18] sm:$0xff] %vm708_vm1, %v703_v54 }
 0x1e9   : > { %711 = vst.msk [vmem:[%s271_s8 + $0x10] sm:$0xff] %vm708_vm1, %v702_v56  ;;  %v928_v58 = vpop.f32.mrb[4].mxu1 }
 0x1ea   : > { %v705_v59 = vmul.f32 %v928_v58, %v520_v23  ;;  %v681_v60 = vpop.f32.mrb[5].mxu1 }
 0x1eb   : > { %v704_v61 = vmul.f32 %v681_v60, %v515_v15 }
 0x1ec   : > { %714 = vst.msk [vmem:[%s271_s8 + $0x28] sm:$0xff] %vm708_vm1, %v705_v59 }
 0x1ed   : > { %713 = vst.msk [vmem:[%s271_s8 + $0x20] sm:$0xff] %vm708_vm1, %v704_v61  ;;  %v931_v49 = vpop.f32.mrb[6].mxu1 }
 0x1ee   : > { %v707_v62 = vmul.f32 %v931_v49, %v530_v35  ;;  %v691_v63 = vpop.f32.mrb[7].mxu1 }
 0x1ef   : > { %v706_v0 = vmul.f32 %v691_v63, %v525_v27 }
 0x1f0   : > { %716 = vst.msk [vmem:[%s271_s8 + $0x38] sm:$0xff] %vm708_vm1, %v707_v62 }
 0x1f1   : > { %715 = vst.msk [vmem:[%s271_s8 + $0x30] sm:$0xff] %vm708_vm1, %v706_v0 }
 0x1f2 PF: > { %s15_s20 = sadd.s32 1, %s1005_s20   ;;  %s1204_s18 = smov %s1001_s19 }
 0x1f3   : > { %p12_p6 = scmp.ge.s32.totalorder %s15_s20, 4   ;;  %s1205_s19 = smov %s1207_s21 }
 0x1f5   :  { %14 = sbr.rel (!%p12_p6) target bundleno = 2 (0x2), region = 83 }

</bundles_post_ra>
